<compile_context>
chip_gen: v6e
topology: v6e:2x2x1
jax: 0.10.0
libtpu: 0.0.40
codegen_flags: <defaults>
</compile_context>

<pallas_src>
import math
import jax
import jax.numpy as jnp
from jax.experimental import pallas as pl
from jax.experimental.pallas import tpu as pltpu

_LOG2 = math.log(2.0)


def _softplus(x):
    # Numerically stable, overflow-free softplus: max(x, 0) + log1p(exp(-|x|)).
    # exp(-|x|) <= 1, so garbage lanes in a masked partial tile cannot overflow.
    return jnp.maximum(x, 0.0) + jnp.log1p(jnp.exp(-jnp.abs(x)))


def physnet_output_kernel(x_ref, wpack_ref, bpack_ref, o_ref):
    """Fused residual block + output head.

    x_ref     : (tile_n, F)        native layout, contiguous HBM tile
    wpack_ref : (2F+P, F)          rows = [W1 ; W2 ; W3]  (PyTorch (out,in))
    bpack_ref : (2F+P, 1)          rows = [b1 ; b2 ; b3]
    o_ref     : (tile_n, P)
    """
    F = x_ref.shape[1]
    P = o_ref.shape[1]

    x = x_ref[...]                       # (tile_n, F)
    xT = x.T                             # (F, tile_n)  one XLU transpose, reused twice

    # Sublane-aligned static slices of the packed parameters (offsets 0, F, 2F
    # are all multiples of 8 at F=32).
    w1 = wpack_ref[0:F, :]               # (F, F)
    w2 = wpack_ref[F:2 * F, :]           # (F, F)
    w3 = wpack_ref[2 * F:2 * F + P, :]   # (P, F)
    b1 = bpack_ref[0:F, :]               # (F, 1)
    b2 = bpack_ref[F:2 * F, :]           # (F, 1)
    b3 = bpack_ref[2 * F:2 * F + P, :]   # (P, 1)

    # --- PhysNetResidual: y = x + linear2(softplus(linear1(x))) ---
    h = _softplus(jnp.dot(w1, xT, preferred_element_type=jnp.float32) + b1)  # (F, tn)
    y = xT + jnp.dot(w2, h, preferred_element_type=jnp.float32) + b2         # (F, tn)

    # --- Output Linear + ShiftedSoftplus (lane-dense in (P, tile_n)) ---
    z = jnp.dot(w3, y, preferred_element_type=jnp.float32) + b3              # (P, tn)
    outT = _softplus(z) - _LOG2                                              # (P, tn)

    # Tiny in-kernel XLU transpose; the (tile_n, P) masked store (~2 KiB) is
    # far cheaper than a trailing wrapper-side transpose launch.
    o_ref[...] = outT.T.astype(o_ref.dtype)                                  # (tn, P)


def _num_tensorcores():
    """Best-effort detection: only v7x has 2 TensorCores per chip."""
    try:
        kind = jax.devices()[0].device_kind.lower()
    except Exception:
        return 1
    return 2 if ("v7" in kind or "7x" in kind) else 1


def _pick_tile_n(n_atoms, n_cores, max_tile_n):
    """Single-TC: fewest grid steps.  Dual-TC (v7x): keep grid a multiple of 2."""
    if n_cores > 1:
        per_core = pl.cdiv(n_atoms, n_cores)
        tile = pl.cdiv(per_core, 128) * 128
    else:
        tile = pl.cdiv(n_atoms, 128) * 128
    return max(128, min(max_tile_n, tile))


def physnet_output(x, wpack, bpack, *, tile_n=None, max_tile_n=4096):
    """x: (N, F) f32, packed params -> (N, P) f32.  No wrapper-side copies."""
    N, F = x.shape
    P = wpack.shape[0] - 2 * F
    assert wpack.shape == (2 * F + P, F)
    assert bpack.shape == (2 * F + P, 1)

    if tile_n is None:
        tile_n = _pick_tile_n(N, _num_tensorcores(), max_tile_n)
    else:
        tile_n = max(128, pl.cdiv(tile_n, 128) * 128)

    grid = (pl.cdiv(N, tile_n),)
    const = lambda i: (0, 0)

    return pl.pallas_call(
        physnet_output_kernel,
        out_shape=jax.ShapeDtypeStruct((N, P), jnp.float32),
        grid_spec=pltpu.PrefetchScalarGridSpec(
            num_scalar_prefetch=0,
            grid=grid,
            in_specs=[
                pl.BlockSpec((tile_n, F), lambda i: (i, 0)),   # contiguous x tile
                pl.BlockSpec((2 * F + P, F), const),           # packed weights (DMA'd once)
                pl.BlockSpec((2 * F + P, 1), const),           # packed biases  (DMA'd once)
            ],
            out_specs=pl.BlockSpec((tile_n, P), lambda i: (i, 0)),
        ),
        compiler_params=pltpu.CompilerParams(
            dimension_semantics=("parallel",)),
    )(x, wpack, bpack)


def init_params(key, number_of_atom_features, number_of_atomic_properties=2):
    """nn.Linear-style init (uniform +-1/sqrt(fan_in)), PyTorch (out, in) layout."""
    F = number_of_atom_features
    P = number_of_atomic_properties
    ks = jax.random.split(key, 6)

    def lin(kw, kb, fan_in, fan_out):
        bound = 1.0 / math.sqrt(fan_in)
        w = jax.random.uniform(kw, (fan_out, fan_in), jnp.float32, -bound, bound)
        b = jax.random.uniform(kb, (fan_out, 1), jnp.float32, -bound, bound)
        return w, b

    w1, b1 = lin(ks[0], ks[1], F, F)   # residual.linear1
    w2, b2 = lin(ks[2], ks[3], F, F)   # residual.linear2
    w3, b3 = lin(ks[4], ks[5], F, P)   # output linear
    return dict(w1=w1, b1=b1, w2=w2, b2=b2, w3=w3, b3=b3)


def pack_params(p):
    """One-time packing (outside the per-call path): 7 operands -> 2."""
    wpack = jnp.concatenate([p["w1"], p["w2"], p["w3"]], axis=0)   # (2F+P, F)
    bpack = jnp.concatenate([p["b1"], p["b2"], p["b3"]], axis=0)   # (2F+P, 1)
    return wpack, bpack


def physnet_output_ref(x, p):
    """Plain-JAX reference (PyTorch semantics) for correctness checking."""
    h = jax.nn.softplus(x @ p["w1"].T + p["b1"][:, 0])
    y = x + (h @ p["w2"].T + p["b2"][:, 0])
    return jax.nn.softplus(y @ p["w3"].T + p["b3"][:, 0]) - jnp.log(2.0)


if __name__ == "__main__":
    key = jax.random.PRNGKey(0)
    k_x, k_p = jax.random.split(key)

    N_ATOMS = 1024     # grid = 1 step on v5e/v6e, 2 parallel steps on v7x
    F = 32             # number_of_atom_features
    P = 2              # number_of_atomic_properties

    x = jax.random.normal(k_x, (N_ATOMS, F), dtype=jnp.float32)
    params = init_params(k_p, F, P)
    wpack, bpack = pack_params(params)

    out = jax.block_until_ready(physnet_output(x, wpack, bpack))
    ref = physnet_output_ref(x, params)

    assert out.shape == (N_ATOMS, P)
    assert jnp.allclose(out, ref, atol=2e-5, rtol=2e-5)

    print("KERNEL_OK")
</pallas_src>

<mosaic_0001>
module attributes {stable_mosaic.version = 11 : i64} {
  func.func @physnet_output_kernel(%arg0: i32, %arg1: memref<1024x32xf32, #tpu.memory_space<vmem>>, %arg2: memref<66x32xf32, #tpu.memory_space<vmem>>, %arg3: memref<66x1xf32, #tpu.memory_space<vmem>>, %arg4: memref<1024x2xf32, #tpu.memory_space<vmem>>) attributes {dimension_semantics = [#tpu.dimension_semantics<parallel>], iteration_bounds = array<i64: 1>, scalar_prefetch = 0 : i64, scratch_operands = 0 : i64, tpu.core_type = #tpu.core_type<tc>, window_params = [{transform_indices = @transform_0, window_bounds = array<i64: 1024, 32>}, {pipeline_mode = #tpu.pipeline_mode<synchronous>, transform_indices = @transform_1, window_bounds = array<i64: 66, 32>}, {pipeline_mode = #tpu.pipeline_mode<synchronous>, transform_indices = @transform_2, window_bounds = array<i64: 66, 1>}, {transform_indices = @transform_3, window_bounds = array<i64: 1024, 2>}]} {
    %c0 = arith.constant 0 : index
    %c0_0 = arith.constant 0 : index
    %0 = vector.load %arg1[%c0, %c0_0] : memref<1024x32xf32, #tpu.memory_space<vmem>>, vector<1024x32xf32>
    %1 = tpu.transpose %0, [1, 0] : vector<1024x32xf32> -> vector<32x1024xf32>
    %c0_1 = arith.constant 0 : index
    %c0_2 = arith.constant 0 : index
    %2 = vector.load %arg2[%c0_1, %c0_2] : memref<66x32xf32, #tpu.memory_space<vmem>>, vector<32x32xf32>
    %c32 = arith.constant 32 : index
    %c0_3 = arith.constant 0 : index
    %3 = vector.load %arg2[%c32, %c0_3] : memref<66x32xf32, #tpu.memory_space<vmem>>, vector<32x32xf32>
    %c64 = arith.constant 64 : index
    %c0_4 = arith.constant 0 : index
    %4 = vector.load %arg2[%c64, %c0_4] : memref<66x32xf32, #tpu.memory_space<vmem>>, vector<2x32xf32>
    %c0_5 = arith.constant 0 : index
    %c0_6 = arith.constant 0 : index
    %5 = vector.load %arg3[%c0_5, %c0_6] : memref<66x1xf32, #tpu.memory_space<vmem>>, vector<32x1xf32>
    %c32_7 = arith.constant 32 : index
    %c0_8 = arith.constant 0 : index
    %6 = vector.load %arg3[%c32_7, %c0_8] : memref<66x1xf32, #tpu.memory_space<vmem>>, vector<32x1xf32>
    %c64_9 = arith.constant 64 : index
    %c0_10 = arith.constant 0 : index
    %7 = vector.load %arg3[%c64_9, %c0_10] : memref<66x1xf32, #tpu.memory_space<vmem>>, vector<2x1xf32>
    %cst = arith.constant dense<0.000000e+00> : vector<32x1024xf32>
    %8 = tpu.matmul %2, %1, %cst {dimension_numbers = #tpu.dot_dimension_numbers<[1], [0], [0], [1], [0, 0, 1, 1], [], []>} : vector<32x32xf32>, vector<32x1024xf32>, vector<32x1024xf32> -> vector<32x1024xf32>
    %9 = vector.broadcast %5 : vector<32x1xf32> to vector<32x1024xf32>
    %10 = arith.addf %8, %9 : vector<32x1024xf32>
    %cst_11 = arith.constant 0.000000e+00 : f32
    %11 = vector.broadcast %cst_11 : f32 to vector<32x1024xf32>
    %12 = arith.maximumf %10, %11 : vector<32x1024xf32>
    %13 = math.absf %10 : vector<32x1024xf32>
    %cst_12 = arith.constant 0.000000e+00 : f32
    %14 = vector.broadcast %cst_12 : f32 to vector<32x1024xf32>
    %15 = arith.subf %14, %13 : vector<32x1024xf32>
    %16 = math.exp %15 : vector<32x1024xf32>
    %17 = math.log1p %16 : vector<32x1024xf32>
    %18 = arith.addf %12, %17 : vector<32x1024xf32>
    %cst_13 = arith.constant dense<0.000000e+00> : vector<32x1024xf32>
    %19 = tpu.matmul %3, %18, %cst_13 {dimension_numbers = #tpu.dot_dimension_numbers<[1], [0], [0], [1], [0, 0, 1, 1], [], []>} : vector<32x32xf32>, vector<32x1024xf32>, vector<32x1024xf32> -> vector<32x1024xf32>
    %20 = arith.addf %1, %19 : vector<32x1024xf32>
    %21 = vector.broadcast %6 : vector<32x1xf32> to vector<32x1024xf32>
    %22 = arith.addf %20, %21 : vector<32x1024xf32>
    %cst_14 = arith.constant dense<0.000000e+00> : vector<2x1024xf32>
    %23 = tpu.matmul %4, %22, %cst_14 {dimension_numbers = #tpu.dot_dimension_numbers<[1], [0], [0], [1], [0, 0, 1, 1], [], []>} : vector<2x32xf32>, vector<32x1024xf32>, vector<2x1024xf32> -> vector<2x1024xf32>
    %24 = vector.broadcast %7 : vector<2x1xf32> to vector<2x1024xf32>
    %25 = arith.addf %23, %24 : vector<2x1024xf32>
    %cst_15 = arith.constant 0.000000e+00 : f32
    %26 = vector.broadcast %cst_15 : f32 to vector<2x1024xf32>
    %27 = arith.maximumf %25, %26 : vector<2x1024xf32>
    %28 = math.absf %25 : vector<2x1024xf32>
    %cst_16 = arith.constant 0.000000e+00 : f32
    %29 = vector.broadcast %cst_16 : f32 to vector<2x1024xf32>
    %30 = arith.subf %29, %28 : vector<2x1024xf32>
    %31 = math.exp %30 : vector<2x1024xf32>
    %32 = math.log1p %31 : vector<2x1024xf32>
    %33 = arith.addf %27, %32 : vector<2x1024xf32>
    %cst_17 = arith.constant 0.693147182 : f32
    %34 = vector.broadcast %cst_17 : f32 to vector<2x1024xf32>
    %35 = arith.subf %33, %34 : vector<2x1024xf32>
    %36 = tpu.transpose %35, [1, 0] : vector<2x1024xf32> -> vector<1024x2xf32>
    %c0_18 = arith.constant 0 : index
    %c0_19 = arith.constant 0 : index
    %37 = vector.load %arg4[%c0_18, %c0_19] : memref<1024x2xf32, #tpu.memory_space<vmem>>, vector<1024x2xf32>
    tpu.vector_store %arg4[%c0_18, %c0_19], %36 {strides = array<i32>} : memref<1024x2xf32, #tpu.memory_space<vmem>>, vector<1024x2xf32>,
    return
  }
  func.func @transform_0(%arg0: i32) -> (i32, i32) {
    %c0_i32 = arith.constant 0 : i32
    %c0_i32_0 = arith.constant 0 : i32
    return %arg0, %c0_i32 : i32, i32
  }
  func.func @transform_1(%arg0: i32) -> (i32, i32) {
    %c0_i32 = arith.constant 0 : i32
    %c0_i32_0 = arith.constant 0 : i32
    %c0_i32_1 = arith.constant 0 : i32
    return %c0_i32, %c0_i32_0 : i32, i32
  }
  func.func @transform_2(%arg0: i32) -> (i32, i32) {
    %c0_i32 = arith.constant 0 : i32
    %c0_i32_0 = arith.constant 0 : i32
    %c0_i32_1 = arith.constant 0 : i32
    return %c0_i32, %c0_i32_0 : i32, i32
  }
  func.func @transform_3(%arg0: i32) -> (i32, i32) {
    %c0_i32 = arith.constant 0 : i32
    %c0_i32_0 = arith.constant 0 : i32
    return %arg0, %c0_i32 : i32, i32
  }
}

</mosaic_0001>

<bundles_post_ra>
// kernel: tpu_custom_call.1
= control target key start
LH: loop header
LB: loop body
LE: loop exit
PB: predicated region body
PF: predicated region fallthrough
CT: control target
= control target key end

     0   :  { %v4639_v44 = vmov 0.0   ;;  %vm436_vm0 = vcmask 261120   ;;  %s4635_s0 = inlined_call_operand.vmem [shape: f32[1024,32], index: 0, kind: input, shape index: {}]   ;;  %s4636_s1 = inlined_call_operand.vmem [shape: f32[66,32], index: 1, kind: input, shape index: {}]   ;;  %s4637_s2 = inlined_call_operand.vmem [shape: f32[66,1], index: 2, kind: input, shape index: {}]   ;;  %s4638_s3 = inlined_call_operand.vmem [shape: f32[1024,2], index: 3, kind: output, shape index: {}]  }
   0x1   :  { %v62_v0 = vld [vmem:[%s4635_s0 + $0x180] sm:$0xff]  ;;  %v63_v2 = vld [vmem:[%s4635_s0 + $0x188] sm:$0xff]  ;;  %v64_v4 = vld [vmem:[%s4635_s0 + $0x190] sm:$0xff]  ;;  %513 = vmatprep.mubr.f32.mxu0 %v4639_v44  ;;  %602 = vmatprep.mubr.f32.mxu1 %v4639_v44 }
   0x2   :  { %v30_v1 = vld [vmem:[%s4635_s0 + $0x80] sm:$0xff]  ;;  %238 = vxpose.xlu1.b32.start [1/16] (narrow) %v62_v0, 32  ;;  %v31_v3 = vld [vmem:[%s4635_s0 + $0x88] sm:$0xff]  ;;  %v32_v5 = vld [vmem:[%s4635_s0 + $0x90] sm:$0xff] }
   0x3   :  { %174 = vxpose.xlu0.b32.start [1/16] (narrow) %v30_v1, 32  ;;  %v65_v6 = vld [vmem:[%s4635_s0 + $0x198] sm:$0xff]  ;;  %v66_v8 = vld [vmem:[%s4635_s0 + $0x1a0] sm:$0xff]  ;;  %v67_v10 = vld [vmem:[%s4635_s0 + $0x1a8] sm:$0xff] }
   0x4   :  { %v33_v7 = vld [vmem:[%s4635_s0 + $0x98] sm:$0xff]  ;;  %v34_v9 = vld [vmem:[%s4635_s0 + $0xa0] sm:$0xff]  ;;  %v35_v11 = vld [vmem:[%s4635_s0 + $0xa8] sm:$0xff] }
   0x5   :  { %v68_v12 = vld [vmem:[%s4635_s0 + $0x1b0] sm:$0xff]  ;;  %v69_v14 = vld [vmem:[%s4635_s0 + $0x1b8] sm:$0xff]  ;;  %v70_v16 = vld [vmem:[%s4635_s0 + $0x1c0] sm:$0xff] }
   0x6   :  { %239 = vxpose.xlu1.b32.cont [2/16] (narrow) %v63_v2, 32  ;;  %v36_v13 = vld [vmem:[%s4635_s0 + $0xb0] sm:$0xff]  ;;  %v37_v15 = vld [vmem:[%s4635_s0 + $0xb8] sm:$0xff]  ;;  %v38_v17 = vld [vmem:[%s4635_s0 + $0xc0] sm:$0xff] }
   0x7   :  { %175 = vxpose.xlu0.b32.cont [2/16] (narrow) %v31_v3, 32  ;;  %v71_v18 = vld [vmem:[%s4635_s0 + $0x1c8] sm:$0xff]  ;;  %v72_v20 = vld [vmem:[%s4635_s0 + $0x1d0] sm:$0xff]  ;;  %v73_v22 = vld [vmem:[%s4635_s0 + $0x1d8] sm:$0xff] }
   0x8   :  { %v39_v19 = vld [vmem:[%s4635_s0 + $0xc8] sm:$0xff]  ;;  %v40_v21 = vld [vmem:[%s4635_s0 + $0xd0] sm:$0xff]  ;;  %v41_v23 = vld [vmem:[%s4635_s0 + $0xd8] sm:$0xff] }
   0x9   :  { %v74_v24 = vld [vmem:[%s4635_s0 + $0x1e0] sm:$0xff]  ;;  %v75_v26 = vld [vmem:[%s4635_s0 + $0x1e8] sm:$0xff]  ;;  %v76_v28 = vld [vmem:[%s4635_s0 + $0x1f0] sm:$0xff] }
   0xa   :  { %240 = vxpose.xlu1.b32.cont [3/16] (narrow) %v64_v4, 32  ;;  %v42_v25 = vld [vmem:[%s4635_s0 + $0xe0] sm:$0xff]  ;;  %v43_v27 = vld [vmem:[%s4635_s0 + $0xe8] sm:$0xff]  ;;  %v44_v29 = vld [vmem:[%s4635_s0 + $0xf0] sm:$0xff] }
   0xb   :  { %176 = vxpose.xlu0.b32.cont [3/16] (narrow) %v32_v5, 32  ;;  %v77_v30 = vld [vmem:[%s4635_s0 + $0x1f8] sm:$0xff]  ;;  %v46_v32 = vld [vmem:[%s4635_s0 + $0x100] sm:$0xff]  ;;  %v47_v34 = vld [vmem:[%s4635_s0 + $0x108] sm:$0xff] }
   0xc   :  { %v45_v31 = vld [vmem:[%s4635_s0 + $0xf8] sm:$0xff]  ;;  %v14_v33 = vld [vmem:[%s4635_s0] sm:$0xff]  ;;  %v15_v35 = vld [vmem:[%s4635_s0 + $0x8] sm:$0xff] }
   0xd   :  { %v48_v36 = vld [vmem:[%s4635_s0 + $0x110] sm:$0xff]  ;;  %v49_v38 = vld [vmem:[%s4635_s0 + $0x118] sm:$0xff]  ;;  %v50_v40 = vld [vmem:[%s4635_s0 + $0x120] sm:$0xff] }
   0xe   :  { %241 = vxpose.xlu1.b32.cont [4/16] (narrow) %v65_v6, 32  ;;  %v16_v37 = vld [vmem:[%s4635_s0 + $0x10] sm:$0xff]  ;;  %v17_v39 = vld [vmem:[%s4635_s0 + $0x18] sm:$0xff]  ;;  %v18_v41 = vld [vmem:[%s4635_s0 + $0x20] sm:$0xff] }
   0xf   :  { %177 = vxpose.xlu0.b32.cont [4/16] (narrow) %v33_v7, 32  ;;  %v51_v42 = vld [vmem:[%s4635_s0 + $0x128] sm:$0xff]  ;;  %v52_v45 = vld [vmem:[%s4635_s0 + $0x130] sm:$0xff]  ;;  %v53_v47 = vld [vmem:[%s4635_s0 + $0x138] sm:$0xff] }
  0x10   :  { %v19_v43 = vld [vmem:[%s4635_s0 + $0x28] sm:$0xff]  ;;  %v20_v46 = vld [vmem:[%s4635_s0 + $0x30] sm:$0xff]  ;;  %v21_v48 = vld [vmem:[%s4635_s0 + $0x38] sm:$0xff] }
  0x11   :  { %v54_v49 = vld [vmem:[%s4635_s0 + $0x140] sm:$0xff]  ;;  %v55_v51 = vld [vmem:[%s4635_s0 + $0x148] sm:$0xff]  ;;  %v56_v53 = vld [vmem:[%s4635_s0 + $0x150] sm:$0xff] }
  0x12   :  { %242 = vxpose.xlu1.b32.cont [5/16] (narrow) %v66_v8, 32  ;;  %v22_v50 = vld [vmem:[%s4635_s0 + $0x40] sm:$0xff]  ;;  %v23_v52 = vld [vmem:[%s4635_s0 + $0x48] sm:$0xff]  ;;  %v24_v54 = vld [vmem:[%s4635_s0 + $0x50] sm:$0xff] }
  0x13   :  { %178 = vxpose.xlu0.b32.cont [5/16] (narrow) %v34_v9, 32  ;;  %v57_v55 = vld [vmem:[%s4635_s0 + $0x158] sm:$0xff]  ;;  %v58_v57 = vld [vmem:[%s4635_s0 + $0x160] sm:$0xff]  ;;  %v59_v59 = vld [vmem:[%s4635_s0 + $0x168] sm:$0xff] }
  0x14   :  { %v25_v56 = vld [vmem:[%s4635_s0 + $0x58] sm:$0xff]  ;;  %v26_v58 = vld [vmem:[%s4635_s0 + $0x60] sm:$0xff]  ;;  %v27_v60 = vld [vmem:[%s4635_s0 + $0x68] sm:$0xff] }
  0x15   :  { %v60_v61 = vld [vmem:[%s4635_s0 + $0x170] sm:$0xff]  ;;  %v61_v63 = vld [vmem:[%s4635_s0 + $0x178] sm:$0xff]  ;;  %v126_v3 = vld [vmem:[%s4635_s0 + $0x380] sm:$0xff] }
  0x16   :  { %243 = vxpose.xlu1.b32.cont [6/16] (narrow) %v67_v10, 32  ;;  %v28_v62 = vld [vmem:[%s4635_s0 + $0x70] sm:$0xff]  ;;  %v29_v0 = vld [vmem:[%s4635_s0 + $0x78] sm:$0xff]  ;;  %v94_v4 = vld [vmem:[%s4635_s0 + $0x280] sm:$0xff] }
  0x17   :  { %179 = vxpose.xlu0.b32.cont [6/16] (narrow) %v35_v11, 32  ;;  %v127_v7 = vld [vmem:[%s4635_s0 + $0x388] sm:$0xff]  ;;  %v128_v11 = vld [vmem:[%s4635_s0 + $0x390] sm:$0xff] }
  0x18   :  { %v95_v8 = vld [vmem:[%s4635_s0 + $0x288] sm:$0xff] }
  0x1a   :  { %244 = vxpose.xlu1.b32.cont [7/16] (narrow) %v68_v12, 32  ;;  %v96_v12 = vld [vmem:[%s4635_s0 + $0x290] sm:$0xff] }
  0x1b   :  { %180 = vxpose.xlu0.b32.cont [7/16] (narrow) %v36_v13, 32 }
  0x1e   :  { %245 = vxpose.xlu1.b32.cont [8/16] (narrow) %v69_v14, 32 }
  0x1f   :  { %181 = vxpose.xlu0.b32.cont [8/16] (narrow) %v37_v15, 32  ;;  %v129_v15 = vld [vmem:[%s4635_s0 + $0x398] sm:$0xff] }
  0x22   :  { %246 = vxpose.xlu1.b32.cont [9/16] (narrow) %v70_v16, 32  ;;  %v97_v16 = vld [vmem:[%s4635_s0 + $0x298] sm:$0xff] }
  0x23   :  { %182 = vxpose.xlu0.b32.cont [9/16] (narrow) %v38_v17, 32  ;;  %v130_v17 = vld [vmem:[%s4635_s0 + $0x3a0] sm:$0xff] }
  0x26   :  { %247 = vxpose.xlu1.b32.cont [10/16] (narrow) %v71_v18, 32  ;;  %v98_v18 = vld [vmem:[%s4635_s0 + $0x2a0] sm:$0xff] }
  0x27   :  { %183 = vxpose.xlu0.b32.cont [10/16] (narrow) %v39_v19, 32  ;;  %v131_v19 = vld [vmem:[%s4635_s0 + $0x3a8] sm:$0xff] }
  0x2a   :  { %248 = vxpose.xlu1.b32.cont [11/16] (narrow) %v72_v20, 32  ;;  %v99_v20 = vld [vmem:[%s4635_s0 + $0x2a8] sm:$0xff] }
  0x2b   :  { %184 = vxpose.xlu0.b32.cont [11/16] (narrow) %v40_v21, 32  ;;  %v132_v21 = vld [vmem:[%s4635_s0 + $0x3b0] sm:$0xff] }
  0x2e   :  { %249 = vxpose.xlu1.b32.cont [12/16] (narrow) %v73_v22, 32  ;;  %v100_v22 = vld [vmem:[%s4635_s0 + $0x2b0] sm:$0xff] }
  0x2f   :  { %185 = vxpose.xlu0.b32.cont [12/16] (narrow) %v41_v23, 32  ;;  %v133_v23 = vld [vmem:[%s4635_s0 + $0x3b8] sm:$0xff] }
  0x32   :  { %250 = vxpose.xlu1.b32.cont [13/16] (narrow) %v74_v24, 32  ;;  %v101_v24 = vld [vmem:[%s4635_s0 + $0x2b8] sm:$0xff] }
  0x33   :  { %186 = vxpose.xlu0.b32.cont [13/16] (narrow) %v42_v25, 32  ;;  %v134_v25 = vld [vmem:[%s4635_s0 + $0x3c0] sm:$0xff] }
  0x36   :  { %251 = vxpose.xlu1.b32.cont [14/16] (narrow) %v75_v26, 32  ;;  %v102_v26 = vld [vmem:[%s4635_s0 + $0x2c0] sm:$0xff] }
  0x37   :  { %187 = vxpose.xlu0.b32.cont [14/16] (narrow) %v43_v27, 32  ;;  %v135_v27 = vld [vmem:[%s4635_s0 + $0x3c8] sm:$0xff] }
  0x3a   :  { %252 = vxpose.xlu1.b32.cont [15/16] (narrow) %v76_v28, 32  ;;  %v103_v28 = vld [vmem:[%s4635_s0 + $0x2c8] sm:$0xff] }
  0x3b   :  { %188 = vxpose.xlu0.b32.cont [15/16] (narrow) %v44_v29, 32  ;;  %v136_v29 = vld [vmem:[%s4635_s0 + $0x3d0] sm:$0xff] }
  0x3e   :  { %253 = vxpose.xlu1.b32.end [16/16] (narrow) %v77_v30, 32  ;;  %v104_v30 = vld [vmem:[%s4635_s0 + $0x2d0] sm:$0xff] }
  0x3f   :  { %189 = vxpose.xlu0.b32.end [16/16] (narrow) %v45_v31, 32  ;;  %v137_v31 = vld [vmem:[%s4635_s0 + $0x3d8] sm:$0xff] }
  0x42   :  { %206 = vxpose.xlu1.b32.start [1/16] (narrow) %v46_v32, 32  ;;  %v105_v32 = vld [vmem:[%s4635_s0 + $0x2d8] sm:$0xff] }
  0x43   :  { %142 = vxpose.xlu0.b32.start [1/16] (narrow) %v14_v33, 32  ;;  %v138_v33 = vld [vmem:[%s4635_s0 + $0x3e0] sm:$0xff] }
  0x46   :  { %207 = vxpose.xlu1.b32.cont [2/16] (narrow) %v47_v34, 32  ;;  %v106_v34 = vld [vmem:[%s4635_s0 + $0x2e0] sm:$0xff] }
  0x47   :  { %143 = vxpose.xlu0.b32.cont [2/16] (narrow) %v15_v35, 32  ;;  %v139_v35 = vld [vmem:[%s4635_s0 + $0x3e8] sm:$0xff] }
  0x4a   :  { %208 = vxpose.xlu1.b32.cont [3/16] (narrow) %v48_v36, 32  ;;  %v107_v36 = vld [vmem:[%s4635_s0 + $0x2e8] sm:$0xff] }
  0x4b   :  { %144 = vxpose.xlu0.b32.cont [3/16] (narrow) %v16_v37, 32  ;;  %v140_v37 = vld [vmem:[%s4635_s0 + $0x3f0] sm:$0xff] }
  0x4e   :  { %209 = vxpose.xlu1.b32.cont [4/16] (narrow) %v49_v38, 32  ;;  %v108_v38 = vld [vmem:[%s4635_s0 + $0x2f0] sm:$0xff] }
  0x4f   :  { %145 = vxpose.xlu0.b32.cont [4/16] (narrow) %v17_v39, 32  ;;  %v141_v39 = vld [vmem:[%s4635_s0 + $0x3f8] sm:$0xff] }
  0x52   :  { %210 = vxpose.xlu1.b32.cont [5/16] (narrow) %v50_v40, 32  ;;  %v109_v40 = vld [vmem:[%s4635_s0 + $0x2f8] sm:$0xff] }
  0x53   :  { %146 = vxpose.xlu0.b32.cont [5/16] (narrow) %v18_v41, 32 }
  0x56   :  { %211 = vxpose.xlu1.b32.cont [6/16] (narrow) %v51_v42, 32 }
  0x57   :  { %147 = vxpose.xlu0.b32.cont [6/16] (narrow) %v19_v43, 32  ;;  %v110_v43 = vld [vmem:[%s4635_s0 + $0x300] sm:$0xff] }
  0x5a   :  { %212 = vxpose.xlu1.b32.cont [7/16] (narrow) %v52_v45, 32  ;;  %v78_v45 = vld [vmem:[%s4635_s0 + $0x200] sm:$0xff] }
  0x5b   :  { %148 = vxpose.xlu0.b32.cont [7/16] (narrow) %v20_v46, 32 }
  0x5e   :  { %213 = vxpose.xlu1.b32.cont [8/16] (narrow) %v53_v47, 32 }
  0x5f   :  { %149 = vxpose.xlu0.b32.cont [8/16] (narrow) %v21_v48, 32  ;;  %v111_v48 = vld [vmem:[%s4635_s0 + $0x308] sm:$0xff] }
  0x62   :  { %214 = vxpose.xlu1.b32.cont [9/16] (narrow) %v54_v49, 32  ;;  %v79_v49 = vld [vmem:[%s4635_s0 + $0x208] sm:$0xff] }
  0x63   :  { %150 = vxpose.xlu0.b32.cont [9/16] (narrow) %v22_v50, 32 }
  0x66   :  { %215 = vxpose.xlu1.b32.cont [10/16] (narrow) %v55_v51, 32 }
  0x67   :  { %151 = vxpose.xlu0.b32.cont [10/16] (narrow) %v23_v52, 32  ;;  %v112_v52 = vld [vmem:[%s4635_s0 + $0x310] sm:$0xff] }
  0x6a   :  { %216 = vxpose.xlu1.b32.cont [11/16] (narrow) %v56_v53, 32  ;;  %v80_v53 = vld [vmem:[%s4635_s0 + $0x210] sm:$0xff] }
  0x6b   :  { %152 = vxpose.xlu0.b32.cont [11/16] (narrow) %v24_v54, 32 }
  0x6e   :  { %217 = vxpose.xlu1.b32.cont [12/16] (narrow) %v57_v55, 32 }
  0x6f   :  { %153 = vxpose.xlu0.b32.cont [12/16] (narrow) %v25_v56, 32  ;;  %v113_v56 = vld [vmem:[%s4635_s0 + $0x318] sm:$0xff] }
  0x72   :  { %218 = vxpose.xlu1.b32.cont [13/16] (narrow) %v58_v57, 32  ;;  %v81_v57 = vld [vmem:[%s4635_s0 + $0x218] sm:$0xff] }
  0x73   :  { %154 = vxpose.xlu0.b32.cont [13/16] (narrow) %v26_v58, 32  ;;  %v114_v58 = vld [vmem:[%s4635_s0 + $0x320] sm:$0xff] }
  0x76   :  { %219 = vxpose.xlu1.b32.cont [14/16] (narrow) %v59_v59, 32  ;;  %v3140_v59 = vld [vmem:[%s4636_s1] sm:$0xff] }
  0x77   :  { %155 = vxpose.xlu0.b32.cont [14/16] (narrow) %v27_v60, 32  ;;  %v82_v60 = vld [vmem:[%s4635_s0 + $0x220] sm:$0xff] }
  0x7a   :  { %220 = vxpose.xlu1.b32.cont [15/16] (narrow) %v60_v61, 32  ;;  %v115_v61 = vld [vmem:[%s4635_s0 + $0x328] sm:$0xff] }
  0x7b   :  { %156 = vxpose.xlu0.b32.cont [15/16] (narrow) %v28_v62, 32  ;;  %v3159_v62 = vld [vmem:[%s4636_s1 + $0x8] sm:$0xff] }
  0x7e   :  { %221 = vxpose.xlu1.b32.end [16/16] (narrow) %v61_v63, 32  ;;  %v2970_v1 = vpop.trf.xlu1  ;;  %v83_v63 = vld [vmem:[%s4635_s0 + $0x228] sm:$0xff] }
  0x7f   :  { %157 = vxpose.xlu0.b32.end [16/16] (narrow) %v29_v0, 32  ;;  %4686 = vst [vmem:[#allocation2_spill] sm:$0xff] %v2970_v1  ;;  %v2972_v2 = vpop.trf.xlu0  ;;  %v116_v0 = vld [vmem:[%s4635_s0 + $0x330] sm:$0xff] }
  0x80   :  { %4687 = vst [vmem:[#allocation3_spill] sm:$0xff] %v2972_v2 }
  0x82   :  { %366 = vxpose.xlu1.b32.start [1/16] (narrow) %v126_v3, 32  ;;  %v2980_v5 = vpop.trf.xlu1  ;;  %v3176_v3 = vld [vmem:[%s4636_s1 + $0x10] sm:$0xff] }
  0x83   :  { %302 = vxpose.xlu0.b32.start [1/16] (narrow) %v94_v4, 32  ;;  %4688 = vst [vmem:[#allocation4_spill] sm:$0xff] %v2980_v5  ;;  %v2982_v6 = vpop.trf.xlu0  ;;  %v84_v4 = vld [vmem:[%s4635_s0 + $0x230] sm:$0xff] }
  0x84   :  { %4689 = vst [vmem:[#allocation5_spill] sm:$0xff] %v2982_v6 }
  0x86   :  { %367 = vxpose.xlu1.b32.cont [2/16] (narrow) %v127_v7, 32  ;;  %v2990_v9 = vpop.trf.xlu1  ;;  %v117_v7 = vld [vmem:[%s4635_s0 + $0x338] sm:$0xff] }
  0x87   :  { %303 = vxpose.xlu0.b32.cont [2/16] (narrow) %v95_v8, 32  ;;  %4690 = vst [vmem:[#allocation6_spill] sm:$0xff] %v2990_v9  ;;  %v2992_v10 = vpop.trf.xlu0  ;;  %v85_v8 = vld [vmem:[%s4635_s0 + $0x238] sm:$0xff] }
  0x88   :  { %4691 = vst [vmem:[#allocation7_spill] sm:$0xff] %v2992_v10 }
  0x8a   :  { %368 = vxpose.xlu1.b32.cont [3/16] (narrow) %v128_v11, 32  ;;  %v3000_v13 = vpop.trf.xlu1  ;;  %v3197_v11 = vld [vmem:[%s4636_s1 + $0x18] sm:$0xff] }
  0x8b   :  { %304 = vxpose.xlu0.b32.cont [3/16] (narrow) %v96_v12, 32  ;;  %4692 = vst [vmem:[#allocation8_spill] sm:$0xff] %v3000_v13  ;;  %v3002_v14 = vpop.trf.xlu0  ;;  %562 = vmatprep.subr.mxu1 %v3000_v13  ;;  %v118_v12 = vld [vmem:[%s4635_s0 + $0x340] sm:$0xff] }
  0x8c   :  { %4693 = vst [vmem:[#allocation9_spill] sm:$0xff] %v3002_v14  ;;  %473 = vmatprep.subr.mxu0 %v3002_v14 }
  0x8e   :  { %369 = vxpose.xlu1.b32.cont [4/16] (narrow) %v129_v15, 32  ;;  %v86_v15 = vld [vmem:[%s4635_s0 + $0x240] sm:$0xff] }
  0x8f   :  { %305 = vxpose.xlu0.b32.cont [4/16] (narrow) %v97_v16, 32  ;;  %v119_v16 = vld [vmem:[%s4635_s0 + $0x348] sm:$0xff] }
  0x92   :  { %370 = vxpose.xlu1.b32.cont [5/16] (narrow) %v130_v17, 32  ;;  %v87_v17 = vld [vmem:[%s4635_s0 + $0x248] sm:$0xff] }
  0x93   :  { %306 = vxpose.xlu0.b32.cont [5/16] (narrow) %v98_v18, 32  ;;  %v120_v18 = vld [vmem:[%s4635_s0 + $0x350] sm:$0xff] }
  0x96   :  { %371 = vxpose.xlu1.b32.cont [6/16] (narrow) %v131_v19, 32  ;;  %v88_v19 = vld [vmem:[%s4635_s0 + $0x250] sm:$0xff] }
  0x97   :  { %307 = vxpose.xlu0.b32.cont [6/16] (narrow) %v99_v20, 32  ;;  %v121_v20 = vld [vmem:[%s4635_s0 + $0x358] sm:$0xff] }
  0x9a   :  { %372 = vxpose.xlu1.b32.cont [7/16] (narrow) %v132_v21, 32  ;;  %v89_v21 = vld [vmem:[%s4635_s0 + $0x258] sm:$0xff] }
  0x9b   :  { %308 = vxpose.xlu0.b32.cont [7/16] (narrow) %v100_v22, 32  ;;  %v122_v22 = vld [vmem:[%s4635_s0 + $0x360] sm:$0xff] }
  0x9e   :  { %373 = vxpose.xlu1.b32.cont [8/16] (narrow) %v133_v23, 32  ;;  %v90_v23 = vld [vmem:[%s4635_s0 + $0x260] sm:$0xff] }
  0x9f   :  { %309 = vxpose.xlu0.b32.cont [8/16] (narrow) %v101_v24, 32  ;;  %v123_v24 = vld [vmem:[%s4635_s0 + $0x368] sm:$0xff] }
  0xa2   :  { %374 = vxpose.xlu1.b32.cont [9/16] (narrow) %v134_v25, 32  ;;  %v91_v25 = vld [vmem:[%s4635_s0 + $0x268] sm:$0xff] }
  0xa3   :  { %310 = vxpose.xlu0.b32.cont [9/16] (narrow) %v102_v26, 32  ;;  %v124_v26 = vld [vmem:[%s4635_s0 + $0x370] sm:$0xff] }
  0xa6   :  { %375 = vxpose.xlu1.b32.cont [10/16] (narrow) %v135_v27, 32  ;;  %v92_v27 = vld [vmem:[%s4635_s0 + $0x270] sm:$0xff] }
  0xa7   :  { %311 = vxpose.xlu0.b32.cont [10/16] (narrow) %v103_v28, 32  ;;  %v125_v28 = vld [vmem:[%s4635_s0 + $0x378] sm:$0xff] }
  0xaa   :  { %376 = vxpose.xlu1.b32.cont [11/16] (narrow) %v136_v29, 32  ;;  %v93_v29 = vld [vmem:[%s4635_s0 + $0x278] sm:$0xff] }
  0xab   :  { %312 = vxpose.xlu0.b32.cont [11/16] (narrow) %v104_v30, 32 }
  0xae   :  { %377 = vxpose.xlu1.b32.cont [12/16] (narrow) %v137_v31, 32 }
  0xaf   :  { %313 = vxpose.xlu0.b32.cont [12/16] (narrow) %v105_v32, 32 }
  0xb2   :  { %378 = vxpose.xlu1.b32.cont [13/16] (narrow) %v138_v33, 32 }
  0xb3   :  { %314 = vxpose.xlu0.b32.cont [13/16] (narrow) %v106_v34, 32 }
  0xb6   :  { %379 = vxpose.xlu1.b32.cont [14/16] (narrow) %v139_v35, 32 }
  0xb7   :  { %315 = vxpose.xlu0.b32.cont [14/16] (narrow) %v107_v36, 32 }
  0xba   :  { %380 = vxpose.xlu1.b32.cont [15/16] (narrow) %v140_v37, 32 }
  0xbb   :  { %316 = vxpose.xlu0.b32.cont [15/16] (narrow) %v108_v38, 32  ;;  %v409_v38 = vld [vmem:[%s4637_s2 + $0x10] sm:$0xff] }
  0xbe   :  { %381 = vxpose.xlu1.b32.end [16/16] (narrow) %v141_v39, 32  ;;  %v3084_v41 = vpop.trf.xlu1  ;;  %v2755_v39 = vmov 0  }
  0xbf   :  { %4694 = vst [vmem:[#allocation10_spill] sm:$0xff] %v3084_v41  ;;  %317 = vxpose.xlu0.b32.end [16/16] (narrow) %v109_v40, 32  ;;  %v3086_v42 = vpop.trf.xlu0  ;;  %v408_v40 = vld [vmem:[%s4637_s2 + $0x8] sm:$0xff] }
  0xc0   :  { %4695 = vst [vmem:[#allocation11_spill] sm:$0xff] %v3086_v42 }
  0xc2   :  { %334 = vxpose.xlu1.b32.start [1/16] (narrow) %v110_v43, 32  ;;  %v3094_v46 = vpop.trf.xlu1  ;;  %v407_v43 = vld [vmem:[%s4637_s2] sm:$0xff] }
  0xc3   :  { %4696 = vst [vmem:[#allocation12_spill] sm:$0xff] %v3094_v46  ;;  %270 = vxpose.xlu0.b32.start [1/16] (narrow) %v78_v45, 32  ;;  %v3096_v47 = vpop.trf.xlu0  ;;  %v410_v45 = vld [vmem:[%s4637_s2 + $0x18] sm:$0xff] }
  0xc4   :  { %4697 = vst [vmem:[#allocation13_spill] sm:$0xff] %v3096_v47 }
  0xc6   :  { %335 = vxpose.xlu1.b32.cont [2/16] (narrow) %v111_v48, 32  ;;  %v3104_v50 = vpop.trf.xlu1  ;;  %v414_v48 = vld [vmem:[%s4637_s2 + $0x38] sm:$0xff] }
  0xc7   :  { %4698 = vst [vmem:[#allocation14_spill] sm:$0xff] %v3104_v50  ;;  %271 = vxpose.xlu0.b32.cont [2/16] (narrow) %v79_v49, 32  ;;  %v3106_v51 = vpop.trf.xlu0  ;;  %v413_v49 = vld [vmem:[%s4637_s2 + $0x30] sm:$0xff] }
  0xc8   :  { %4699 = vst [vmem:[#allocation15_spill] sm:$0xff] %v3106_v51 }
  0xca   :  { %336 = vxpose.xlu1.b32.cont [3/16] (narrow) %v112_v52, 32  ;;  %v3114_v54 = vpop.trf.xlu1  ;;  %v412_v52 = vld [vmem:[%s4637_s2 + $0x28] sm:$0xff] }
  0xcb   :  { %4700 = vst [vmem:[#allocation16_spill] sm:$0xff] %v3114_v54  ;;  %272 = vxpose.xlu0.b32.cont [3/16] (narrow) %v80_v53, 32  ;;  %v3116_v55 = vpop.trf.xlu0  ;;  %563 = vmatpush1.msra.mxu1 %v3114_v54  ;;  %v411_v53 = vld [vmem:[%s4637_s2 + $0x20] sm:$0xff] }
  0xcc   :  { %4701 = vst [vmem:[#allocation17_spill] sm:$0xff] %v3116_v55  ;;  %474 = vmatpush1.msra.mxu0 %v3116_v55  ;;  %564 = vmatprep.subr.mxu1 %v2990_v9 }
  0xcd   :  { %475 = vmatprep.subr.mxu0 %v2992_v10  ;;  %565 = vmatpush1.msra.mxu1 %v3104_v50 }
  0xce   :  { %476 = vmatpush1.msra.mxu0 %v3106_v51  ;;  %337 = vxpose.xlu1.b32.cont [4/16] (narrow) %v113_v56, 32  ;;  %v415_v56 = vld [vmem:[%s4637_s2 + $0x40] sm:$0x3] }
  0xcf   :  { %566 = vmatprep.subr.mxu1 %v2980_v5  ;;  %273 = vxpose.xlu0.b32.cont [4/16] (narrow) %v81_v57, 32 }
  0xd0   :  { %477 = vmatprep.subr.mxu0 %v2982_v6  ;;  %567 = vmatpush1.msra.mxu1 %v3094_v46 }
  0xd1   :  { %478 = vmatpush1.msra.mxu0 %v3096_v47  ;;  %568 = vmatprep.subr.mxu1 %v2970_v1 }
  0xd2   :  { %479 = vmatprep.subr.mxu0 %v2972_v2  ;;  %569 = vmatpush1.msra.mxu1 %v3084_v41 }
  0xd3   :  { %480 = vmatpush1.msra.mxu0 %v3086_v42  ;;  %338 = vxpose.xlu1.b32.cont [5/16] (narrow) %v114_v58, 32 }
  0xd4   :  { %2550 = vmatmul.mubr.msk.f32.vlgmr.msra.gmra.mxu1 %vm436_vm0, %v3140_v59  ;;  %274 = vxpose.xlu0.b32.cont [5/16] (narrow) %v82_v60, 32 }
  0xd5   :  { %2546 = vmatmul.mubr.msk.f32.vlgmr.msra.gmra.mxu0 %vm436_vm0, %v3140_v59  ;;  %608 = vmatprep.mubr.f32.mxu1 %v4639_v44 }
  0xd6   :  { %519 = vmatprep.mubr.f32.mxu0 %v4639_v44 }
  0xd7   :  { %339 = vxpose.xlu1.b32.cont [6/16] (narrow) %v115_v61, 32 }
  0xd8   :  { %2551 = vmatmul.mubr.msk.f32.gmra.mxu1 %vm436_vm0, %v3159_v62  ;;  %275 = vxpose.xlu0.b32.cont [6/16] (narrow) %v83_v63, 32 }
  0xd9   :  { %2547 = vmatmul.mubr.msk.f32.gmra.mxu0 %vm436_vm0, %v3159_v62  ;;  %614 = vmatprep.mubr.f32.mxu1 %v4639_v44 }
  0xda   :  { %525 = vmatprep.mubr.f32.mxu0 %v4639_v44 }
  0xdb   :  { %340 = vxpose.xlu1.b32.cont [7/16] (narrow) %v116_v0, 32 }
  0xdc   :  { %2552 = vmatmul.mubr.msk.f32.gmra.mxu1 %vm436_vm0, %v3176_v3  ;;  %276 = vxpose.xlu0.b32.cont [7/16] (narrow) %v84_v4, 32 }
  0xdd   :  { %2548 = vmatmul.mubr.msk.f32.gmra.mxu0 %vm436_vm0, %v3176_v3  ;;  %620 = vmatprep.mubr.f32.mxu1 %v4639_v44 }
  0xde   :  { %531 = vmatprep.mubr.f32.mxu0 %v4639_v44 }
  0xdf   :  { %341 = vxpose.xlu1.b32.cont [8/16] (narrow) %v117_v7, 32 }
  0xe0   :  { %2553 = vmatmul.mubr.msk.f32.gmra.mxu1 %vm436_vm0, %v3197_v11  ;;  %277 = vxpose.xlu0.b32.cont [8/16] (narrow) %v85_v8, 32 }
  0xe1   :  { %2549 = vmatmul.mubr.msk.f32.gmra.mxu0 %vm436_vm0, %v3197_v11  ;;  %780 = vmatprep.mubr.f32.mxu1 %v4639_v44 }
  0xe2   :  { %691 = vmatprep.mubr.f32.mxu0 %v4639_v44 }
  0xe3   :  { %342 = vxpose.xlu1.b32.cont [9/16] (narrow) %v118_v12, 32 }
  0xe4   :  { %278 = vxpose.xlu0.b32.cont [9/16] (narrow) %v86_v15, 32 }
  0xe7   :  { %343 = vxpose.xlu1.b32.cont [10/16] (narrow) %v119_v16, 32 }
  0xe8   :  { %279 = vxpose.xlu0.b32.cont [10/16] (narrow) %v87_v17, 32 }
  0xeb   :  { %344 = vxpose.xlu1.b32.cont [11/16] (narrow) %v120_v18, 32 }
  0xec   :  { %280 = vxpose.xlu0.b32.cont [11/16] (narrow) %v88_v19, 32 }
  0xef   :  { %345 = vxpose.xlu1.b32.cont [12/16] (narrow) %v121_v20, 32 }
  0xf0   :  { %281 = vxpose.xlu0.b32.cont [12/16] (narrow) %v89_v21, 32 }
  0xf3   :  { %346 = vxpose.xlu1.b32.cont [13/16] (narrow) %v122_v22, 32 }
  0xf4   :  { %282 = vxpose.xlu0.b32.cont [13/16] (narrow) %v90_v23, 32 }
  0xf7   :  { %347 = vxpose.xlu1.b32.cont [14/16] (narrow) %v123_v24, 32 }
  0xf8   :  { %283 = vxpose.xlu0.b32.cont [14/16] (narrow) %v91_v25, 32 }
  0xfb   :  { %348 = vxpose.xlu1.b32.cont [15/16] (narrow) %v124_v26, 32 }
  0xfc   :  { %284 = vxpose.xlu0.b32.cont [15/16] (narrow) %v92_v27, 32 }
  0xfe   :  { %v3254_v30 = vpop.trf.xlu1 }
  0xff   :  { %4702 = vst [vmem:[#allocation18_spill] sm:$0xff] %v3254_v30  ;;  %v3256_v31 = vpop.trf.xlu0  ;;  %349 = vxpose.xlu1.b32.end [16/16] (narrow) %v125_v28, 32 }
 0x100   :  { %4703 = vst [vmem:[#allocation19_spill] sm:$0xff] %v3256_v31  ;;  %285 = vxpose.xlu0.b32.end [16/16] (narrow) %v93_v29, 32 }
 0x102   :  { %v3258_v32 = vpop.trf.xlu1 }
 0x103   :  { %4704 = vst [vmem:[#allocation20_spill] sm:$0xff] %v3258_v32  ;;  %v3260_v33 = vpop.trf.xlu0 }
 0x104   :  { %4705 = vst [vmem:[#allocation21_spill] sm:$0xff] %v3260_v33 }
 0x106   :  { %v3262_v34 = vpop.trf.xlu1 }
 0x107   :  { %4706 = vst [vmem:[#allocation22_spill] sm:$0xff] %v3262_v34  ;;  %v3264_v35 = vpop.trf.xlu0 }
 0x108   :  { %4707 = vst [vmem:[#allocation23_spill] sm:$0xff] %v3264_v35 }
 0x10a   :  { %v3266_v36 = vpop.trf.xlu1 }
 0x10b   :  { %4708 = vst [vmem:[#allocation24_spill] sm:$0xff] %v3266_v36  ;;  %v3268_v37 = vpop.trf.xlu0  ;;  %740 = vmatprep.subr.mxu1 %v3266_v36 }
 0x10c   :  { %4709 = vst [vmem:[#allocation25_spill] sm:$0xff] %v3268_v37  ;;  %651 = vmatprep.subr.mxu0 %v3268_v37 }
 0x11d   :  { %2593 = vset.pattern.permute.xlu1 %v2755_v39 }
 0x11e   :  { %428 = vperm.xlu1 %2593, %v409_v38  }
 0x122   :  { %423 = vperm.xlu1 %2593, %v408_v40  }
 0x126   :  { %418 = vperm.xlu1 %2593, %v407_v43  }
 0x129   :  { %2592 = vset.pattern.permute.xlu0 %v2755_v39 }
 0x12a   :  { %433 = vperm.xlu0 %2592, %v410_v45   ;;  %1702 = vperm.xlu1 %2593, %v414_v48  }
 0x12e   :  { %1697 = vperm.xlu0 %2592, %v413_v49   ;;  %1692 = vperm.xlu1 %2593, %v412_v52  }
 0x132   :  { %1687 = vperm.xlu0 %2592, %v411_v53   ;;  %1739 = vperm.xlu1 %2593, %v415_v56  }
 0x13f   :  { %v3299_v57 = vpop.trf.xlu1 }
 0x140   :  { %4710 = vst [vmem:[#allocation26_spill] sm:$0xff] %v3299_v57  ;;  %v3301_v58 = vpop.trf.xlu0 }
 0x141   :  { %4711 = vst [vmem:[#allocation27_spill] sm:$0xff] %v3301_v58 }
 0x143   :  { %v3303_v60 = vpop.trf.xlu1 }
 0x144   :  { %4712 = vst [vmem:[#allocation28_spill] sm:$0xff] %v3303_v60  ;;  %v3305_v61 = vpop.trf.xlu0 }
 0x145   :  { %4713 = vst [vmem:[#allocation29_spill] sm:$0xff] %v3305_v61 }
 0x147   :  { %v3307_v63 = vpop.trf.xlu1 }
 0x148   :  { %4714 = vst [vmem:[#allocation30_spill] sm:$0xff] %v3307_v63  ;;  %v3309_v0 = vpop.trf.xlu0 }
 0x149   :  { %4715 = vst [vmem:[#allocation31_spill] sm:$0xff] %v3309_v0 }
 0x14b   :  { %v3311_v4 = vpop.trf.xlu1 }
 0x14c   :  { %4716 = vst [vmem:[#allocation32_spill] sm:$0xff] %v3311_v4  ;;  %v3313_v7 = vpop.trf.xlu0  ;;  %741 = vmatpush1.msra.mxu1 %v3311_v4 }
 0x14d   :  { %4717 = vst [vmem:[#allocation33_spill] sm:$0xff] %v3313_v7  ;;  %652 = vmatpush1.msra.mxu0 %v3313_v7  ;;  %742 = vmatprep.subr.mxu1 %v3262_v34 }
 0x14e   :  { %653 = vmatprep.subr.mxu0 %v3264_v35  ;;  %743 = vmatpush1.msra.mxu1 %v3307_v63 }
 0x14f   :  { %654 = vmatpush1.msra.mxu0 %v3309_v0  ;;  %744 = vmatprep.subr.mxu1 %v3258_v32 }
 0x150   :  { %655 = vmatprep.subr.mxu0 %v3260_v33  ;;  %745 = vmatpush1.msra.mxu1 %v3303_v60 }
 0x151   :  { %656 = vmatpush1.msra.mxu0 %v3305_v61  ;;  %746 = vmatprep.subr.mxu1 %v3254_v30 }
 0x152   :  { %657 = vmatprep.subr.mxu0 %v3256_v31  ;;  %747 = vmatpush1.msra.mxu1 %v3299_v57 }
 0x153   :  { %658 = vmatpush1.msra.mxu0 %v3301_v58  ;;  %2558 = vmatmul.mubr.msk.f32.vlgmr.msra.gmra.mxu1 %vm436_vm0, %v3140_v59 }
 0x154   :  { %2554 = vmatmul.mubr.msk.f32.vlgmr.msra.gmra.mxu0 %vm436_vm0, %v3140_v59  ;;  %786 = vmatprep.mubr.f32.mxu1 %v4639_v44 }
 0x155   :  { %697 = vmatprep.mubr.f32.mxu0 %v4639_v44 }
 0x157   :  { %2559 = vmatmul.mubr.msk.f32.gmra.mxu1 %vm436_vm0, %v3159_v62 }
 0x158   :  { %2555 = vmatmul.mubr.msk.f32.gmra.mxu0 %vm436_vm0, %v3159_v62  ;;  %792 = vmatprep.mubr.f32.mxu1 %v4639_v44 }
 0x159   :  { %703 = vmatprep.mubr.f32.mxu0 %v4639_v44 }
 0x15b   :  { %2560 = vmatmul.mubr.msk.f32.gmra.mxu1 %vm436_vm0, %v3176_v3 }
 0x15c   :  { %2556 = vmatmul.mubr.msk.f32.gmra.mxu0 %vm436_vm0, %v3176_v3  ;;  %798 = vmatprep.mubr.f32.mxu1 %v4639_v44 }
 0x15d   :  { %709 = vmatprep.mubr.f32.mxu0 %v4639_v44 }
 0x15f   :  { %2561 = vmatmul.mubr.msk.f32.gmra.mxu1 %vm436_vm0, %v3197_v11 }
 0x160   :  { %2557 = vmatmul.mubr.msk.f32.gmra.mxu0 %vm436_vm0, %v3197_v11  ;;  %1450 = vmatprep.mubr.f32.mxu1 %v4639_v44 }
 0x161   :  { %1361 = vmatprep.mubr.f32.mxu0 %v4639_v44 }
 0x194   :  { %v3353_v59 = vpop.f32.mrf.mxu1 }
 0x195   :  { %v3355_v62 = vpop.f32.mrf.mxu0 }
 0x196   :  { %v3357_v8 = vpop.f32.mrf.mxu1 }
 0x197   :  { %v3359_v3 = vpop.f32.mrf.mxu0 }
 0x198   :  { %v610_v12 = vpop.f32.mrf.mxu1 }
 0x199   :  { %v521_v15 = vpop.f32.mrf.mxu0  ;;  %v3361_v17 = vpop.permute.xlu1 %428 }
 0x19a   :  { %v612_v16 = vpop.f32.mrf.mxu1 }
 0x19b   :  { %v523_v18 = vpop.f32.mrf.mxu0 }
 0x19c   :  { %v616_v19 = vpop.f32.mrf.mxu1 }
 0x19d   :  { %v527_v11 = vpop.f32.mrf.mxu0  ;;  %v3364_v20 = vadd.f32 %v616_v19, %v3361_v17  ;;  %v3369_v23 = vpop.permute.xlu1 %423 }
 0x19e   :  { %v3367_v21 = vadd.f32 %v527_v11, %v3361_v17  ;;  %v618_v22 = vpop.f32.mrf.mxu1  ;;  %v3376_v27 = vadd.f32 %v523_v18, %v3369_v23  ;;  %v3383_v39 = vadd.f32 %v612_v16, %v3369_v23  ;;  %v3390_v16 = vadd.f32 %v521_v15, %v3369_v23 }
 0x19f   :  { %v855_v24 = vand.u32 2147483647, %v3364_v20  ;;  %v3373_v25 = vadd.f32 %v618_v22, %v3361_v17  ;;  %v529_v26 = vpop.f32.mrf.mxu0 }
 0x1a0   :  { %v853_v28 = vand.u32 2147483647, %v3367_v21  ;;  %v3380_v29 = vadd.f32 %v529_v26, %v3361_v17  ;;  %v622_v38 = vpop.f32.mrf.mxu1  ;;  %v846_v52 = vand.u32 2147483647, %v3376_v27  ;;  %v848_v18 = vand.u32 2147483647, %v3383_v39 }
 0x1a1   :  { %v887_v40 = vsub.f32 0.0, %v855_v24  ;;  %v856_v43 = vand.u32 2147483647, %v3373_v25  ;;  %v533_v49 = vpop.f32.mrf.mxu0  ;;  %v3415_v61 = vpop.permute.xlu1 %418 }
 0x1a2   :  { %v885_v45 = vsub.f32 0.0, %v853_v28  ;;  %v854_v48 = vand.u32 2147483647, %v3380_v29  ;;  %v624_v22 = vpop.f32.mrf.mxu1  ;;  %v878_v26 = vsub.f32 0.0, %v846_v52  ;;  %v880_v44 = vsub.f32 0.0, %v848_v18 }
 0x1a3   :  { %v937_v53 = vmul.f32 1.442695, %v887_v40  ;;  %v888_v56 = vsub.f32 0.0, %v856_v43  ;;  %v535_v57 = vpop.f32.mrf.mxu0  ;;  %v845_v52 = vand.u32 2147483647, %v3390_v16 }
 0x1a4   :  { %v933_v19 = vmul.f32 1.442695, %v885_v45  ;;  %v886_v11 = vsub.f32 0.0, %v854_v48  ;;  %v919_v60 = vmul.f32 1.442695, %v878_v26 }
 0x1a5   :  { %2594 = vpow2.f32 %v937_v53  ;;  %v939_v24 = vmul.f32 1.442695, %v888_v56  ;;  %v3392_v30 = vpop.permute.xlu0 %433  ;;  %v923_v48 = vmul.f32 1.442695, %v880_v44  ;;  %v877_v44 = vsub.f32 0.0, %v845_v52 }
 0x1a6   :  { %2596 = vpow2.f32 %v933_v19  ;;  %v935_v28 = vmul.f32 1.442695, %v886_v11  ;;  %v3395_v40 = vadd.f32 %v535_v57, %v3392_v30  ;;  %v3398_v43 = vadd.f32 %v624_v22, %v3392_v30 }
 0x1a7   :  { %2598 = vpow2.f32 %v939_v24  ;;  %v3401_v45 = vadd.f32 %v533_v49, %v3392_v30  ;;  %v3404_v15 = vadd.f32 %v622_v38, %v3392_v30  ;;  %v3412_v19 = vadd.f32 %v610_v12, %v3369_v23 }
 0x1a8   :  { %2600 = vpow2.f32 %v935_v28  ;;  %v862_v53 = vand.u32 2147483647, %v3395_v40  ;;  %v864_v56 = vand.u32 2147483647, %v3398_v43  ;;  %v917_v63 = vmul.f32 1.442695, %v877_v44 }
 0x1a9   :  { %v861_v57 = vand.u32 2147483647, %v3401_v45  ;;  %v863_v18 = vand.u32 2147483647, %v3404_v15  ;;  %2602 = vpow2.f32 %v919_v60  ;;  %v847_v32 = vand.u32 2147483647, %v3412_v19 }
 0x1aa   :  { %v894_v49 = vsub.f32 0.0, %v862_v53  ;;  %v896_v11 = vsub.f32 0.0, %v864_v56  ;;  %2604 = vpow2.f32 %v923_v48  ;;  %v3424_v52 = vadd.f32 %v3359_v3, %v3415_v61 }
 0x1ab   :  { %v893_v22 = vsub.f32 0.0, %v861_v57  ;;  %v895_v38 = vsub.f32 0.0, %v863_v18  ;;  %v879_v12 = vsub.f32 0.0, %v847_v32  ;;  %v3431_v32 = vadd.f32 %v3357_v8, %v3415_v61 }
 0x1ac   :  { %v951_v26 = vmul.f32 1.442695, %v894_v49  ;;  %v955_v24 = vmul.f32 1.442695, %v896_v11  ;;  %v838_v44 = vand.u32 2147483647, %v3424_v52 }
 0x1ad   :  { %v949_v28 = vmul.f32 1.442695, %v893_v22  ;;  %v953_v31 = vmul.f32 1.442695, %v895_v38  ;;  %v921_v60 = vmul.f32 1.442695, %v879_v12 }
 0x1ae   :  { %2606 = vpow2.f32 %v951_v26  ;;  %v3445_v26 = vadd.f32 %v3355_v62, %v3415_v61  ;;  %v3462_v33 = vsub.f32 0.0, %v838_v44 }
 0x1af   :  { %2608 = vpow2.f32 %v955_v24 }
 0x1b0   :  { %2610 = vpow2.f32 %v949_v28 }
 0x1b1   :  { %2612 = vpow2.f32 %v953_v31  ;;  %v3471_v31 = vadd.f32 %v3353_v59, %v3415_v61 }
 0x1b2   :  { %v3417_v53 = vpop.eup %2594  ;;  %2614 = vpow2.f32 %v917_v63 }
 0x1b3   :  { %v3419_v56 = vpop.eup %2596  ;;  %v1127_v48 = vadd.f32 1.0, %v3417_v53  ;;  %2616 = vpow2.f32 %v921_v60  ;;  %v1130_v3 = vmul.f32 -0.5, %v3417_v53  ;;  %v840_v60 = vand.u32 2147483647, %v3431_v32 }
 0x1b4   :  { %v3426_v57 = vpop.eup %2598  ;;  %v1109_v18 = vadd.f32 1.0, %v3419_v56  ;;  %v1133_v34 = vand.u32 2147483647, %v3417_v53 }
 0x1b5   :  { %v3433_v49 = vpop.eup %2600  ;;  %v1136_v22 = vadd.f32 1.0, %v3426_v57  ;;  %v1131_v62 = vadd.f32 1.0, %v1130_v3  ;;  %v1139_v11 = vmul.f32 -0.5, %v3426_v57  ;;  %v3467_v3 = vsub.f32 0.0, %v840_v60 }
 0x1b6   :  { %2618 = vlog2.f32 %v1109_v18  ;;  %v1118_v63 = vadd.f32 1.0, %v3433_v49  ;;  %v3447_v24 = vpop.eup %2602  ;;  %v1121_v28 = vmul.f32 -0.5, %v3433_v49  ;;  %vm3496_vm2 = vcmp.lt.f32.partialorder %v1133_v34, 0.0004427343 }
 0x1b7   :  { %2620 = vlog2.f32 %v1127_v48  ;;  %v3452_v18 = vpop.eup %2604  ;;  %v1112_v48 = vmul.f32 -0.5, %v3419_v56  ;;  %v1046_v8 = vadd.f32 1.0, %v3447_v24  ;;  %v3477_v58 = vmul.f32 %v3417_v53, %v1131_v62 }
 0x1b8   :  { %2622 = vlog2.f32 %v1136_v22  ;;  %v1064_v22 = vadd.f32 1.0, %v3452_v18  ;;  %v1049_v60 = vmul.f32 -0.5, %v3447_v24  ;;  %v1122_v35 = vadd.f32 1.0, %v1121_v28 }
 0x1b9   :  { %2624 = vlog2.f32 %v1118_v63  ;;  %v1115_v63 = vand.u32 2147483647, %v3419_v56  ;;  %v1113_v12 = vadd.f32 1.0, %v1112_v48  ;;  %v1142_v48 = vand.u32 2147483647, %v3426_v57 }
 0x1ba   :  { %2626 = vlog2.f32 %v1046_v8  ;;  %v1124_v53 = vand.u32 2147483647, %v3433_v49  ;;  %v1140_v62 = vadd.f32 1.0, %v1139_v11  ;;  %v1050_v5 = vadd.f32 1.0, %v1049_v60 }
 0x1bb   :  { %v2607_v36 = vpop.eup %2606  ;;  %2628 = vlog2.f32 %v1064_v22  ;;  %vm3484_vm1 = vcmp.lt.f32.partialorder %v1115_v63, 0.0004427343  ;;  %v1114_v22 = vmul.f32 %v3419_v56, %v1113_v12  ;;  %v1067_v11 = vmul.f32 -0.5, %v3452_v18 }
 0x1bc   :  { %v3473_v38 = vpop.eup %2608  ;;  %v1190_v44 = vadd.f32 1.0, %v2607_v36  ;;  %v1193_v8 = vmul.f32 -0.5, %v2607_v36  ;;  %v1196_v46 = vand.u32 2147483647, %v2607_v36  ;;  %v3503_v56 = vmul.f32 %v3433_v49, %v1122_v35 }
 0x1bd   :  { %v2611_v0 = vpop.eup %2610  ;;  %v1208_v37 = vadd.f32 1.0, %v3473_v38  ;;  %v1211_v1 = vmul.f32 -0.5, %v3473_v38  ;;  %v1214_v50 = vand.u32 2147483647, %v3473_v38  ;;  %vm3505_vm3 = vcmp.lt.f32.partialorder %v1142_v48, 0.0004427343 }
 0x1be   :  { %v3481_v4 = vpop.eup %2612  ;;  %2630 = vlog2.f32 %v1190_v44  ;;  %v1181_v59 = vadd.f32 1.0, %v2611_v0  ;;  %v1052_v34 = vand.u32 2147483647, %v3447_v24  ;;  %v1194_v2 = vadd.f32 1.0, %v1193_v8 }
 0x1bf   :  { %2632 = vlog2.f32 %v1208_v37  ;;  %v3489_v41 = vpop.eup %2614  ;;  %v1199_v28 = vadd.f32 1.0, %v3481_v4  ;;  %v1184_v37 = vmul.f32 -0.5, %v2611_v0  ;;  %v1202_v13 = vmul.f32 -0.5, %v3481_v4 }
 0x1c0   :  { %2634 = vlog2.f32 %v1181_v59  ;;  %v3494_v44 = vpop.eup %2616  ;;  %vm3511_vm4 = vcmp.lt.f32.partialorder %v1124_v53, 0.0004427343  ;;  %v3516_v9 = vmul.f32 %v3426_v57, %v1140_v62  ;;  %v1070_v35 = vand.u32 2147483647, %v3452_v18 }
 0x1c1   :  { %2636 = vlog2.f32 %v1199_v28  ;;  %v1212_v28 = vadd.f32 1.0, %v1211_v1  ;;  %v1187_v47 = vand.u32 2147483647, %v2611_v0  ;;  %v1037_v54 = vadd.f32 1.0, %v3489_v41 }
 0x1c2   :  { %vm3520_vm5 = vcmp.lt.f32.partialorder %v1196_v46, 0.0004427343  ;;  %v1185_v53 = vadd.f32 1.0, %v1184_v37  ;;  %v3525_v51 = vmul.f32 %v3447_v24, %v1050_v5  ;;  %v1068_v14 = vadd.f32 1.0, %v1067_v11 }
 0x1c3   :  { %v2619_v42 = vpop.eup %2618  ;;  %vm3529_vm6 = vcmp.lt.f32.partialorder %v1214_v50, 0.0004427343  ;;  %v1205_v1 = vand.u32 2147483647, %v3481_v4  ;;  %2638 = vlog2.f32 %v1037_v54  ;;  %v1203_v10 = vadd.f32 1.0, %v1202_v13 }
 0x1c4   :  { %v2621_v59 = vpop.eup %2620  ;;  %v1111_v48 = vmul.f32 0.6931472, %v2619_v42  ;;  %v1195_v42 = vmul.f32 %v2607_v36, %v1194_v2  ;;  %v1055_v55 = vadd.f32 1.0, %v3494_v44  ;;  %v1213_v5 = vmul.f32 %v3473_v38, %v1212_v28 }
 0x1c5   :  { %v2623_v49 = vpop.eup %2622  ;;  %v3527_v57 = vmul.f32 0.6931472, %v2621_v59  ;;  %vm3538_vm7 = vcmp.lt.f32.partialorder %v1187_v47, 0.0004427343  ;;  %vm3542_vm8 = vcmp.lt.f32.partialorder %v1052_v34, 0.0004427343  ;;  %v1186_v2 = vmul.f32 %v2611_v0, %v1185_v53 }
 0x1c6   :  { %v2625_v6 = vpop.eup %2624  ;;  %v1138_v46 = vmul.f32 0.6931472, %v2623_v49  ;;  %v1117_v37 = vsel %vm3484_vm1, %v1114_v22, %v1111_v48  ;;  %v3547_v13 = vmul.f32 %v3452_v18, %v1068_v14  ;;  %v1040_v36 = vmul.f32 -0.5, %v3489_v41 }
 0x1c7   :  { %v1120_v50 = vmul.f32 0.6931472, %v2625_v6  ;;  %v2627_v54 = vpop.eup %2626  ;;  %2640 = vlog2.f32 %v1055_v55  ;;  %v1135_v47 = vsel %vm3496_vm2, %v3477_v58, %v3527_v57  ;;  %vm3554_vm9 = vcmp.lt.f32.partialorder %v1205_v1, 0.0004427343 }
 0x1c8   :  { %v2629_v7 = vpop.eup %2628  ;;  %vm3558_vm10 = vcmp.lt.f32.partialorder %v1070_v35, 0.0004427343  ;;  %v903_v14 = vmul.f32 1.442695, %v3462_v33  ;;  %v4738_v18 = vmax.f32 %v3367_v21, 0.0  ;;  %v1204_v22 = vmul.f32 %v3481_v4, %v1203_v10 }
 0x1c9   :  { %v1144_v58 = vsel %vm3505_vm3, %v3516_v9, %v1138_v46  ;;  %v907_v63 = vmul.f32 1.442695, %v3467_v3  ;;  %v1126_v35 = vsel %vm3511_vm4, %v3503_v56, %v1120_v50  ;;  %v1048_v49 = vmul.f32 0.6931472, %v2627_v54 }
 0x1ca   :  { %v1269_v55 = vadd.f32 %v1117_v37, %v4738_v18  ;;  %2642 = vpow2.f32 %v903_v14  ;;  %v1041_v21 = vadd.f32 1.0, %v1040_v36  ;;  %v4739_v10 = vand.u32 2147483647, %v3445_v26 }
 0x1cb   :  { %v2631_v0 = vpop.eup %2630  ;;  %2644 = vpow2.f32 %v907_v63  ;;  %v1058_v3 = vmul.f32 -0.5, %v3494_v44  ;;  %v839_v28 = vand.u32 2147483647, %v3471_v31  ;;  %v4740_v56 = vmax.f32 %v3395_v40, 0.0 }
 0x1cc   :  { %v2633_v34 = vpop.eup %2632  ;;  %v1192_v59 = vmul.f32 0.6931472, %v2631_v0  ;;  %v869_v4 = vsub.f32 0.0, %v4739_v10  ;;  %v1066_v1 = vmul.f32 0.6931472, %v2629_v7  ;;  %v4741_v37 = vmax.f32 %v3398_v43, 0.0 }
 0x1cd   :  { %v2635_v33 = vpop.eup %2634  ;;  %v1210_v48 = vmul.f32 0.6931472, %v2633_v34  ;;  %v871_v54 = vsub.f32 0.0, %v839_v28  ;;  %v4742_v36 = vmax.f32 %v3401_v45, 0.0  ;;  %v1054_v40 = vsel %vm3542_vm8, %v3525_v51, %v1048_v49 }
 0x1ce   :  { %v1198_v9 = vsel %vm3520_vm5, %v1195_v42, %v1192_v59  ;;  %v1183_v12 = vmul.f32 0.6931472, %v2635_v33  ;;  %v2637_v53 = vpop.eup %2636  ;;  %v901_v46 = vmul.f32 1.442695, %v869_v4  ;;  %v1043_v62 = vand.u32 2147483647, %v3489_v41 }
 0x1cf   :  { %v1278_v60 = vadd.f32 %v1198_v9, %v4740_v56  ;;  %v1216_v57 = vsel %vm3529_vm6, %v1213_v5, %v1210_v48  ;;  %v1201_v42 = vmul.f32 0.6931472, %v2637_v53  ;;  %v4743_v5 = vmax.f32 %v3380_v29, 0.0 }
 0x1d0   :  { %v1280_v50 = vadd.f32 %v1216_v57, %v4741_v37  ;;  %v1189_v8 = vsel %vm3538_vm7, %v1186_v2, %v1183_v12  ;;  %2646 = vpow2.f32 %v901_v46  ;;  %v4744_v2 = vmax.f32 %v3373_v25, 0.0  ;;  %v2639_v45 = vpop.eup %2638 }
 0x1d1   :  { %1321 = vmatprep.subr.mxu0 %v1278_v60  ;;  %v1277_v14 = vadd.f32 %v1189_v8, %v4742_v36  ;;  %v1207_v43 = vsel %vm3554_vm9, %v1204_v22, %v1201_v42  ;;  %v1270_v24 = vadd.f32 %v1126_v35, %v4743_v5  ;;  %v905_v0 = vmul.f32 1.442695, %v871_v54 }
 0x1d2   :  { %1410 = vmatprep.subr.mxu1 %v1280_v50  ;;  %v1272_v7 = vadd.f32 %v1144_v58, %v4744_v2  ;;  %v4745_v18 = vmax.f32 %v3404_v15, 0.0  ;;  %v1072_v51 = vsel %vm3558_vm10, %v3547_v13, %v1066_v1  ;;  %v1059_v63 = vadd.f32 1.0, %v1058_v3 }
 0x1d3   :  { %1322 = vmatpush1.msra.mxu0 %v1277_v14  ;;  %v1061_v6 = vand.u32 2147483647, %v3494_v44  ;;  %v4746_v29 = vmax.f32 %v3376_v27, 0.0  ;;  %v1039_v34 = vmul.f32 0.6931472, %v2639_v45  ;;  %v1042_v25 = vmul.f32 %v3489_v41, %v1041_v21 }
 0x1d4   :  { %v1279_v11 = vadd.f32 %v1207_v43, %v4745_v18  ;;  %1323 = vmatprep.subr.mxu0 %v1270_v24  ;;  %2648 = vpow2.f32 %v905_v0  ;;  %v4747_v58 = vmax.f32 %v3364_v20, 0.0  ;;  %v813_v15 = vmax.f32 %v3390_v16, 0.0  ;;  %v2641_v13 = vpop.eup %2640 }
 0x1d5   :  { %v1262_v22 = vadd.f32 %v1054_v40, %v4746_v29  ;;  %1324 = vmatpush1.msra.mxu0 %v1269_v55  ;;  %vm1044_vm11 = vcmp.lt.f32.partialorder %v1043_v62, 0.0004427343  ;;  %v4748_v38 = vmax.f32 %v3383_v39, 0.0  ;;  %v1057_v33 = vmul.f32 0.6931472, %v2641_v13  ;;  %v3621_v29 = vld [vmem:[%s4636_s1 + $0x20] sm:$0xff] }
 0x1d6   :  { %v1271_v59 = vadd.f32 %v1135_v47, %v4747_v58  ;;  %1411 = vmatpush1.msra.mxu1 %v1279_v11  ;;  %v1045_v27 = vsel %vm1044_vm11, %v1042_v25, %v1039_v34  ;;  %v1060_v41 = vmul.f32 %v3494_v44, %v1059_v63  ;;  %v815_v20 = vmax.f32 %v3412_v19, 0.0  ;;  %4749 = vst [vmem:[#allocation34_spill] sm:$0xff] %v3621_v29  ;;  %v3630_v58 = vld [vmem:[%s4636_s1 + $0x28] sm:$0xff] }
 0x1d7   :  { %1412 = vmatprep.subr.mxu1 %v1272_v7  ;;  %1325 = vmatprep.subr.mxu0 %v1262_v22  ;;  %v1264_v35 = vadd.f32 %v1072_v51, %v4748_v38  ;;  %v1261_v49 = vadd.f32 %v1045_v27, %v813_v15  ;;  %vm1062_vm12 = vcmp.lt.f32.partialorder %v1061_v6, 0.0004427343  ;;  %v2643_v47 = vpop.eup %2642  ;;  %v806_v46 = vmax.f32 %v3424_v52, 0.0  ;;  %4751 = vst [vmem:[#allocation35_spill] sm:$0xff] %v3630_v58 }
 0x1d8   :  { %1413 = vmatpush1.msra.mxu1 %v1271_v59  ;;  %v1063_v16 = vsel %vm1062_vm12, %v1060_v41, %v1057_v33  ;;  %v2645_v55 = vpop.eup %2644  ;;  %v974_v21 = vadd.f32 1.0, %v2643_v47  ;;  %v977_v12 = vmul.f32 -0.5, %v2643_v47  ;;  %v980_v28 = vand.u32 2147483647, %v2643_v47  ;;  %v3652_v59 = vld [vmem:[%s4636_s1 + $0x38] sm:$0xff] }
 0x1d9   :  { %1414 = vmatprep.subr.mxu1 %v1264_v35  ;;  %1326 = vmatpush1.msra.mxu0 %v1261_v49  ;;  %v1263_v48 = vadd.f32 %v1063_v16, %v815_v20  ;;  %v992_v10 = vadd.f32 1.0, %v2645_v55  ;;  %v995_v3 = vmul.f32 -0.5, %v2645_v55  ;;  %v998_v60 = vand.u32 2147483647, %v2645_v55  ;;  %4753 = vst [vmem:[#allocation37_spill] sm:$0xff] %v3652_v59 }
 0x1da   :  { %2650 = vlog2.f32 %v974_v21  ;;  %v978_v19 = vadd.f32 1.0, %v977_v12  ;;  %vm981_vm13 = vcmp.lt.f32.partialorder %v980_v28, 0.0004427343  ;;  %v808_v40 = vmax.f32 %v3431_v32, 0.0 }
 0x1db   :  { %1415 = vmatpush1.msra.mxu1 %v1263_v48  ;;  %2652 = vlog2.f32 %v992_v10  ;;  %v996_v53 = vadd.f32 1.0, %v995_v3  ;;  %vm999_vm14 = vcmp.lt.f32.partialorder %v998_v60, 0.0004427343  ;;  %v805_v18 = vmax.f32 %v3445_v26, 0.0 }
 0x1dc   :  { %v979_v50 = vmul.f32 %v2643_v47, %v978_v19  ;;  %v807_v22 = vmax.f32 %v3471_v31, 0.0  ;;  %v4750_v26 = vmov 0.0   ;;  %v3641_v31 = vld [vmem:[%s4636_s1 + $0x30] sm:$0xff] }
 0x1dd   :  { %v2647_v39 = vpop.eup %2646  ;;  %v997_v54 = vmul.f32 %v2645_v55, %v996_v53  ;;  %4752 = vst [vmem:[#allocation36_spill] sm:$0xff] %v3641_v31 }
 0x1de   :  { %v965_v4 = vadd.f32 1.0, %v2647_v39  ;;  %v968_v56 = vmul.f32 -0.5, %v2647_v39  ;;  %v971_v62 = vand.u32 2147483647, %v2647_v39 }
 0x1e0   :  { %2654 = vlog2.f32 %v965_v4  ;;  %v969_v36 = vadd.f32 1.0, %v968_v56  ;;  %vm972_vm15 = vcmp.lt.f32.partialorder %v971_v62, 0.0004427343 }
 0x1e1   :  { %v2649_v9 = vpop.eup %2648 }
 0x1e2   :  { %v983_v44 = vadd.f32 1.0, %v2649_v9  ;;  %v986_v8 = vmul.f32 -0.5, %v2649_v9  ;;  %v970_v52 = vmul.f32 %v2647_v39, %v969_v36  ;;  %v989_v45 = vand.u32 2147483647, %v2649_v9 }
 0x1e4   :  { %2656 = vlog2.f32 %v983_v44  ;;  %v987_v7 = vadd.f32 1.0, %v986_v8  ;;  %vm990_vm1 = vcmp.lt.f32.partialorder %v989_v45, 0.0004427343 }
 0x1e6   :  { %v988_v32 = vmul.f32 %v2649_v9, %v987_v7 }
 0x1e7   :  { %v2651_v57 = vpop.eup %2650 }
 0x1e8   :  { %v2653_v1 = vpop.eup %2652  ;;  %v976_v37 = vmul.f32 0.6931472, %v2651_v57 }
 0x1e9   :  { %v994_v42 = vmul.f32 0.6931472, %v2653_v1 }
 0x1ea   :  { %v982_v14 = vsel %vm981_vm13, %v979_v50, %v976_v37 }
 0x1eb   :  { %v1254_v43 = vadd.f32 %v982_v14, %v806_v46  ;;  %v1000_v5 = vsel %vm999_vm14, %v997_v54, %v994_v42 }
 0x1ec   :  { %v1256_v2 = vadd.f32 %v1000_v5, %v808_v40 }
 0x1ed   :  { %v2655_v24 = vpop.eup %2654  ;;  %1327 = vmatprep.subr.mxu0 %v1254_v43 }
 0x1ee   :  { %v967_v0 = vmul.f32 0.6931472, %v2655_v24  ;;  %1416 = vmatprep.subr.mxu1 %v1256_v2 }
 0x1f0   :  { %v973_v51 = vsel %vm972_vm15, %v970_v52, %v967_v0 }
 0x1f1   :  { %v2657_v11 = vpop.eup %2656  ;;  %v1253_v63 = vadd.f32 %v973_v51, %v805_v18 }
 0x1f2   :  { %v985_v6 = vmul.f32 0.6931472, %v2657_v11 }
 0x1f3   :  { %1328 = vmatpush1.msra.mxu0 %v1253_v63 }
 0x1f4   :  { %v991_v34 = vsel %vm990_vm1, %v988_v32, %v985_v6  ;;  %2562 = vmatmul.mubr.msk.f32.vlgmr.msra.gmra.mxu0 %vm436_vm0, %v3621_v29 }
 0x1f5   :  { %v1255_v25 = vadd.f32 %v991_v34, %v807_v22  ;;  %1367 = vmatprep.mubr.f32.mxu0 %v4750_v26 }
 0x1f7   :  { %1417 = vmatpush1.msra.mxu1 %v1255_v25 }
 0x1f8   :  { %2566 = vmatmul.mubr.msk.f32.vlgmr.msra.gmra.mxu1 %vm436_vm0, %v3621_v29  ;;  %2563 = vmatmul.mubr.msk.f32.gmra.mxu0 %vm436_vm0, %v3630_v58 }
 0x1f9   :  { %1456 = vmatprep.mubr.f32.mxu1 %v4750_v26  ;;  %1373 = vmatprep.mubr.f32.mxu0 %v4750_v26 }
 0x1fc   :  { %2567 = vmatmul.mubr.msk.f32.gmra.mxu1 %vm436_vm0, %v3630_v58  ;;  %2564 = vmatmul.mubr.msk.f32.gmra.mxu0 %vm436_vm0, %v3641_v31 }
 0x1fd   :  { %1462 = vmatprep.mubr.f32.mxu1 %v4750_v26  ;;  %1379 = vmatprep.mubr.f32.mxu0 %v4750_v26 }
 0x200   :  { %2568 = vmatmul.mubr.msk.f32.gmra.mxu1 %vm436_vm0, %v3641_v31  ;;  %2565 = vmatmul.mubr.msk.f32.gmra.mxu0 %vm436_vm0, %v3652_v59 }
 0x201   :  { %1468 = vmatprep.mubr.f32.mxu1 %v4750_v26  ;;  %1539 = vmatprep.mubr.f32.mxu0 %v4750_v26 }
 0x204   :  { %2569 = vmatmul.mubr.msk.f32.gmra.mxu1 %vm436_vm0, %v3652_v59 }
 0x205   :  { %1628 = vmatprep.mubr.f32.mxu1 %v4750_v26 }
 0x213   :  { %v782_v15 = vpop.f32.mrf.mxu1 }
 0x214   :  { %v693_v13 = vpop.f32.mrf.mxu0  ;;  %v3664_v38 = vadd.f32 %v782_v15, %v3415_v61 }
 0x215   :  { %v784_v35 = vpop.f32.mrf.mxu1  ;;  %v3667_v49 = vadd.f32 %v693_v13, %v3415_v61 }
 0x216   :  { %v695_v27 = vpop.f32.mrf.mxu0  ;;  %v843_v47 = vand.u32 2147483647, %v3664_v38 }
 0x217   :  { %4754 = vst [vmem:[#allocation38_spill] sm:$0xff] %v3667_v49  ;;  %v788_v33 = vpop.f32.mrf.mxu1  ;;  %v841_v21 = vand.u32 2147483647, %v3667_v49  ;;  %v3709_v52 = vadd.f32 %v695_v27, %v3415_v61 }
 0x218   :  { %v699_v41 = vpop.f32.mrf.mxu0  ;;  %v3670_v20 = vadd.f32 %v788_v33, %v3369_v23  ;;  %v875_v44 = vsub.f32 0.0, %v843_v47 }
 0x219   :  { %v3674_v16 = vadd.f32 %v699_v41, %v3369_v23  ;;  %v790_v55 = vpop.f32.mrf.mxu1  ;;  %v873_v53 = vsub.f32 0.0, %v841_v21  ;;  %4756 = vst [vmem:[#allocation40_spill] sm:$0xff] %v3709_v52 }
 0x21a   :  { %4755 = vst [vmem:[#allocation39_spill] sm:$0xff] %v3670_v20  ;;  %v701_v48 = vpop.f32.mrf.mxu0  ;;  %v851_v4 = vand.u32 2147483647, %v3670_v20  ;;  %v913_v37 = vmul.f32 1.442695, %v875_v44  ;;  %v3697_v62 = vadd.f32 %v790_v55, %v3369_v23 }
 0x21b   :  { %v849_v10 = vand.u32 2147483647, %v3674_v16  ;;  %v794_v39 = vpop.f32.mrf.mxu1  ;;  %v3680_v9 = vadd.f32 %v701_v48, %v3369_v23  ;;  %v909_v14 = vmul.f32 1.442695, %v873_v53  ;;  %v3712_v23 = vadd.f32 %v784_v35, %v3415_v61 }
 0x21c   :  { %v705_v12 = vpop.f32.mrf.mxu0  ;;  %v883_v57 = vsub.f32 0.0, %v851_v4  ;;  %v3687_v46 = vadd.f32 %v794_v39, %v3361_v17  ;;  %v852_v6 = vand.u32 2147483647, %v3697_v62  ;;  %v842_v35 = vand.u32 2147483647, %v3709_v52 }
 0x21d   :  { %v881_v3 = vsub.f32 0.0, %v849_v10  ;;  %v796_v28 = vpop.f32.mrf.mxu1  ;;  %v850_v56 = vand.u32 2147483647, %v3680_v9  ;;  %v3684_v1 = vadd.f32 %v705_v12, %v3361_v17  ;;  %4757 = vst [vmem:[#allocation41_spill] sm:$0xff] %v3712_v23  ;;  %v844_v61 = vand.u32 2147483647, %v3712_v23 }
 0x21e   :  { %v707_v19 = vpop.f32.mrf.mxu0  ;;  %v3693_v8 = vadd.f32 %v796_v28, %v3361_v17  ;;  %v859_v43 = vand.u32 2147483647, %v3687_v46  ;;  %v929_v5 = vmul.f32 1.442695, %v883_v57  ;;  %v884_v33 = vsub.f32 0.0, %v852_v6 }
 0x21f   :  { %v925_v60 = vmul.f32 1.442695, %v881_v3  ;;  %v3690_v50 = vadd.f32 %v707_v19, %v3361_v17  ;;  %v857_v42 = vand.u32 2147483647, %v3684_v1  ;;  %v800_v36 = vpop.f32.mrf.mxu1  ;;  %v882_v40 = vsub.f32 0.0, %v850_v56 }
 0x220   :  { %v711_v54 = vpop.f32.mrf.mxu0  ;;  %v860_v17 = vand.u32 2147483647, %v3693_v8  ;;  %v3706_v0 = vadd.f32 %v800_v36, %v3392_v30  ;;  %v891_v51 = vsub.f32 0.0, %v859_v43  ;;  %v876_v48 = vsub.f32 0.0, %v844_v61 }
 0x221   :  { %2658 = vpow2.f32 %v925_v60  ;;  %v889_v24 = vsub.f32 0.0, %v857_v42  ;;  %v858_v2 = vand.u32 2147483647, %v3690_v50  ;;  %v3703_v7 = vadd.f32 %v711_v54, %v3392_v30  ;;  %v802_v39 = vpop.f32.mrf.mxu1 }
 0x222   :  { %2660 = vpow2.f32 %v913_v37  ;;  %v713_v18 = vpop.f32.mrf.mxu0  ;;  %v927_v11 = vmul.f32 1.442695, %v882_v40  ;;  %v892_v34 = vsub.f32 0.0, %v860_v17  ;;  %v867_v25 = vand.u32 2147483647, %v3706_v0 }
 0x223   :  { %v890_v45 = vsub.f32 0.0, %v858_v2  ;;  %2662 = vpow2.f32 %v909_v14  ;;  %v865_v63 = vand.u32 2147483647, %v3703_v7  ;;  %v941_v32 = vmul.f32 1.442695, %v889_v24 }
 0x224   :  { %2664 = vpow2.f32 %v929_v5  ;;  %v3718_v15 = vadd.f32 %v713_v18, %v3392_v30  ;;  %v945_v27 = vmul.f32 1.442695, %v891_v51  ;;  %v947_v41 = vmul.f32 1.442695, %v892_v34 }
 0x225   :  { %v943_v22 = vmul.f32 1.442695, %v890_v45  ;;  %v897_v13 = vsub.f32 0.0, %v865_v63  ;;  %2666 = vpow2.f32 %v927_v11  ;;  %v899_v47 = vsub.f32 0.0, %v867_v25 }
 0x226   :  { %2668 = vpow2.f32 %v941_v32  ;;  %v866_v55 = vand.u32 2147483647, %v3718_v15  ;;  %v874_v10 = vsub.f32 0.0, %v842_v35  ;;  %v931_v4 = vmul.f32 1.442695, %v884_v33 }
 0x227   :  { %2670 = vpow2.f32 %v943_v22  ;;  %v957_v21 = vmul.f32 1.442695, %v897_v13  ;;  %v961_v12 = vmul.f32 1.442695, %v899_v47  ;;  %v915_v28 = vmul.f32 1.442695, %v876_v48 }
 0x228   :  { %2672 = vpow2.f32 %v945_v27  ;;  %v898_v3 = vsub.f32 0.0, %v866_v55  ;;  %v3728_v53 = vadd.f32 %v802_v39, %v3392_v30  ;;  %v911_v56 = vmul.f32 1.442695, %v874_v10 }
 0x229   :  { %2674 = vpow2.f32 %v947_v41 }
 0x22a   :  { %2676 = vpow2.f32 %v957_v21  ;;  %v959_v60 = vmul.f32 1.442695, %v898_v3  ;;  %v868_v42 = vand.u32 2147483647, %v3728_v53 }
 0x22b   :  { %2678 = vpow2.f32 %v961_v12 }
 0x22c   :  { %2680 = vpow2.f32 %v931_v4  ;;  %v900_v30 = vsub.f32 0.0, %v868_v42 }
 0x22d   :  { %2682 = vpow2.f32 %v959_v60 }
 0x22e   :  { %v3723_v44 = vpop.eup %2658  ;;  %2684 = vpow2.f32 %v915_v28  ;;  %v963_v45 = vmul.f32 1.442695, %v900_v30 }
 0x22f   :  { %v3725_v19 = vpop.eup %2660  ;;  %v1073_v37 = vadd.f32 1.0, %v3723_v44  ;;  %2686 = vpow2.f32 %v911_v56  ;;  %v1076_v47 = vmul.f32 -0.5, %v3723_v44 }
 0x230   :  { %v3730_v57 = vpop.eup %2662  ;;  %v1019_v36 = vadd.f32 1.0, %v3725_v19  ;;  %v1022_v43 = vmul.f32 -0.5, %v3725_v19 }
 0x231   :  { %v3734_v54 = vpop.eup %2664  ;;  %v1001_v40 = vadd.f32 1.0, %v3730_v57  ;;  %2688 = vlog2.f32 %v1073_v37  ;;  %v1004_v25 = vmul.f32 -0.5, %v3730_v57 }
 0x232   :  { %v3741_v24 = vpop.eup %2666  ;;  %v1091_v17 = vadd.f32 1.0, %v3734_v54  ;;  %2690 = vlog2.f32 %v1019_v36  ;;  %v1023_v61 = vadd.f32 1.0, %v1022_v43  ;;  %v1094_v27 = vmul.f32 -0.5, %v3734_v54 }
 0x233   :  { %v3745_v18 = vpop.eup %2668  ;;  %2692 = vpow2.f32 %v963_v45  ;;  %v1082_v13 = vadd.f32 1.0, %v3741_v24  ;;  %v1005_v56 = vadd.f32 1.0, %v1004_v25  ;;  %v1079_v36 = vand.u32 2147483647, %v3723_v44 }
 0x234   :  { %v3750_v6 = vpop.eup %2670  ;;  %2694 = vlog2.f32 %v1001_v40  ;;  %v1145_v33 = vadd.f32 1.0, %v3745_v18  ;;  %v3775_v60 = vmul.f32 %v3725_v19, %v1023_v61  ;;  %v1095_v30 = vadd.f32 1.0, %v1094_v27 }
 0x235   :  { %v3757_v35 = vpop.eup %2672  ;;  %2696 = vlog2.f32 %v1091_v17  ;;  %v1154_v21 = vadd.f32 1.0, %v3750_v6  ;;  %v1077_v17 = vadd.f32 1.0, %v1076_v47  ;;  %v1085_v25 = vmul.f32 -0.5, %v3741_v24 }
 0x236   :  { %v3766_v10 = vpop.eup %2674  ;;  %v1163_v37 = vadd.f32 1.0, %v3757_v35  ;;  %2698 = vlog2.f32 %v1082_v13  ;;  %v1148_v5 = vmul.f32 -0.5, %v3745_v18  ;;  %v3794_v14 = vmul.f32 %v3730_v57, %v1005_v56 }
 0x237   :  { %v3772_v28 = vpop.eup %2676  ;;  %2700 = vlog2.f32 %v1145_v33  ;;  %v1172_v27 = vadd.f32 1.0, %v3766_v10  ;;  %v1166_v47 = vmul.f32 -0.5, %v3757_v35  ;;  %vm3800_vm2 = vcmp.lt.f32.partialorder %v1079_v36, 0.0004427343 }
 0x238   :  { %v3778_v42 = vpop.eup %2678  ;;  %v1217_v40 = vadd.f32 1.0, %v3772_v28  ;;  %2702 = vlog2.f32 %v1154_v21  ;;  %v1078_v56 = vmul.f32 %v3723_v44, %v1077_v17  ;;  %v1086_v55 = vadd.f32 1.0, %v1085_v25 }
 0x239   :  { %v3782_v43 = vpop.eup %2680  ;;  %v1235_v45 = vadd.f32 1.0, %v3778_v42  ;;  %v1149_v13 = vadd.f32 1.0, %v1148_v5  ;;  %v1157_v36 = vmul.f32 -0.5, %v3750_v6  ;;  %v1169_v48 = vand.u32 2147483647, %v3757_v35 }
 0x23a   :  { %v3786_v61 = vpop.eup %2682  ;;  %2704 = vlog2.f32 %v1217_v40  ;;  %v3805_v40 = vmul.f32 %v3734_v54, %v1095_v30  ;;  %v1100_v32 = vadd.f32 1.0, %v3782_v43  ;;  %v1151_v30 = vand.u32 2147483647, %v3745_v18 }
 0x23b   :  { %v3791_v33 = vpop.eup %2684  ;;  %2706 = vlog2.f32 %v1163_v37  ;;  %v1226_v21 = vadd.f32 1.0, %v3786_v61  ;;  %v1103_v44 = vmul.f32 -0.5, %v3782_v43  ;;  %v1160_v5 = vand.u32 2147483647, %v3750_v6 }
 0x23c   :  { %v3798_v2 = vpop.eup %2686  ;;  %2708 = vlog2.f32 %v1235_v45  ;;  %v1167_v45 = vadd.f32 1.0, %v1166_v47  ;;  %v1220_v22 = vmul.f32 -0.5, %v3772_v28  ;;  %v1175_v3 = vmul.f32 -0.5, %v3766_v10 }
 0x23d   :  { %2710 = vlog2.f32 %v1226_v21  ;;  %v3824_v47 = vmul.f32 %v3741_v24, %v1086_v55  ;;  %v3827_v4 = vmul.f32 %v3745_v18, %v1149_v13  ;;  %v1158_v63 = vadd.f32 1.0, %v1157_v36 }
 0x23e   :  { %v2689_v34 = vpop.eup %2688  ;;  %2712 = vlog2.f32 %v1172_v27  ;;  %vm3832_vm3 = vcmp.lt.f32.partialorder %v1151_v30, 0.0004427343  ;;  %v1223_v11 = vand.u32 2147483647, %v3772_v28  ;;  %v1229_v55 = vmul.f32 -0.5, %v3786_v61 }
 0x23f   :  { %v2691_v12 = vpop.eup %2690  ;;  %v1075_v37 = vmul.f32 0.6931472, %v2689_v34  ;;  %2714 = vlog2.f32 %v1100_v32  ;;  %v1238_v34 = vmul.f32 -0.5, %v3778_v42  ;;  %vm3845_vm4 = vcmp.lt.f32.partialorder %v1160_v5, 0.0004427343 }
 0x240   :  { %v3812_v41 = vpop.eup %2692  ;;  %v3819_v27 = vmul.f32 0.6931472, %v2691_v12  ;;  %v3837_v12 = vmul.f32 %v3757_v35, %v1167_v45  ;;  %v1178_v30 = vand.u32 2147483647, %v3766_v10  ;;  %v1241_v35 = vand.u32 2147483647, %v3778_v42 }
 0x241   :  { %v2695_v17 = vpop.eup %2694  ;;  %v1244_v25 = vadd.f32 1.0, %v3812_v41  ;;  %v1081_v18 = vsel %vm3800_vm2, %v1078_v56, %v1075_v37  ;;  %v1176_v45 = vadd.f32 1.0, %v1175_v3  ;;  %v1010_v31 = vadd.f32 1.0, %v3798_v2 }
 0x242   :  { %v2697_v21 = vpop.eup %2696  ;;  %v3830_v39 = vmul.f32 0.6931472, %v2695_v17  ;;  %v1239_v26 = vadd.f32 1.0, %v1238_v34  ;;  %v1232_v51 = vand.u32 2147483647, %v3786_v61  ;;  %v1159_v56 = vmul.f32 %v3750_v6, %v1158_v63 }
 0x243   :  { %2716 = vlog2.f32 %v1244_v25  ;;  %v2699_v59 = vpop.eup %2698  ;;  %v3843_v13 = vmul.f32 0.6931472, %v2697_v21  ;;  %v1221_v25 = vadd.f32 1.0, %v1220_v22  ;;  %v1028_v37 = vadd.f32 1.0, %v3791_v33 }
 0x244   :  { %v2701_v17 = vpop.eup %2700  ;;  %v4764_v21 = vmax.f32 %v3674_v16, 0.0  ;;  %vm3859_vm5 = vcmp.lt.f32.partialorder %v1223_v11, 0.0004427343  ;;  %v1230_v3 = vadd.f32 1.0, %v1229_v55  ;;  %2718 = vlog2.f32 %v1010_v31 }
 0x245   :  { %v2703_v58 = vpop.eup %2702  ;;  %v1147_v49 = vmul.f32 0.6931472, %v2701_v17  ;;  %v1247_v52 = vmul.f32 -0.5, %v3812_v41  ;;  %2720 = vlog2.f32 %v1028_v37  ;;  %v1222_v6 = vmul.f32 %v3772_v28, %v1221_v25 }
 0x246   :  { %v3857_v29 = vadd.f32 %v1081_v18, %v4764_v21  ;;  %vm3865_vm6 = vcmp.lt.f32.partialorder %v1241_v35, 0.0004427343  ;;  %v1156_v16 = vmul.f32 0.6931472, %v2703_v58  ;;  %v3870_v11 = vmul.f32 %v3766_v10, %v1176_v45 }
 0x247   :  { %v2705_v5 = vpop.eup %2704  ;;  %vm3872_vm7 = vcmp.lt.f32.partialorder %v1178_v30, 0.0004427343  ;;  %vm3876_vm8 = vcmp.lt.f32.partialorder %v1169_v48, 0.0004427343  ;;  %v1240_v17 = vmul.f32 %v3778_v42, %v1239_v26  ;;  %vm3881_vm9 = vcmp.lt.f32.partialorder %v1232_v51, 0.0004427343 }
 0x248   :  { %v2707_v23 = vpop.eup %2706  ;;  %v1219_v34 = vmul.f32 0.6931472, %v2705_v5  ;;  %v1084_v25 = vmul.f32 0.6931472, %v2699_v59  ;;  %v1104_v58 = vadd.f32 1.0, %v1103_v44  ;;  %v1231_v37 = vmul.f32 %v3786_v61, %v1230_v3 }
 0x249   :  { %v2709_v63 = vpop.eup %2708  ;;  %v4775_v10 = vand.u32 2147483647, %v3730_v57  ;;  %v1165_v45 = vmul.f32 0.6931472, %v2707_v23  ;;  %v1250_v5 = vand.u32 2147483647, %v3812_v41  ;;  %v1153_v26 = vsel %vm3832_vm3, %v3827_v4, %v1147_v49 }
 0x24a   :  { %v2711_v31 = vpop.eup %2710  ;;  %v1225_v59 = vsel %vm3859_vm5, %v1222_v6, %v1219_v34  ;;  %v1248_v42 = vadd.f32 1.0, %v1247_v52  ;;  %v4778_v57 = vand.u32 2147483647, %v3741_v24  ;;  %v1237_v51 = vmul.f32 0.6931472, %v2709_v63 }
 0x24b   :  { %v2713_v35 = vpop.eup %2712  ;;  %vm3887_vm10 = vcmp.lt.f32.partialorder %v4775_v10, 0.0004427343  ;;  %v1228_v48 = vmul.f32 0.6931472, %v2711_v31  ;;  %v1162_v21 = vsel %vm3845_vm4, %v1159_v56, %v1156_v16  ;;  %v1013_v49 = vmul.f32 -0.5, %v3798_v2 }
 0x24c   :  { %vm3900_vm11 = vcmp.lt.f32.partialorder %v4778_v57, 0.0004427343  ;;  %v2715_v23 = vpop.eup %2714  ;;  %v4781_v4 = vand.u32 2147483647, %v3725_v19  ;;  %v4784_v24 = vmax.f32 %v3718_v15, 0.0  ;;  %v1031_v34 = vmul.f32 -0.5, %v3791_v33 }
 0x24d   :  { %v1234_v61 = vsel %vm3881_vm9, %v1231_v37, %v1228_v48  ;;  %v1174_v22 = vmul.f32 0.6931472, %v2713_v35  ;;  %v1090_v3 = vsel %vm3900_vm11, %v3824_v47, %v1084_v25  ;;  %v4785_v56 = vmax.f32 %v3684_v1, 0.0 }
 0x24e   :  { %vm3911_vm12 = vcmp.lt.f32.partialorder %v4781_v4, 0.0004427343  ;;  %v1282_v32 = vadd.f32 %v1234_v61, %v4784_v24  ;;  %v4786_v19 = vmax.f32 %v3703_v7, 0.0  ;;  %vm3925_vm13 = vcmp.lt.f32.partialorder %v1250_v5, 0.0004427343 }
 0x24f   :  { %v1273_v63 = vadd.f32 %v1153_v26, %v4785_v56  ;;  %v1106_v15 = vand.u32 2147483647, %v3782_v43  ;;  %v1249_v28 = vmul.f32 %v3812_v41, %v1248_v42  ;;  %v4789_v47 = vmax.f32 %v3690_v50, 0.0  ;;  %v4812_v56 = vld [vmem:[#allocation36_spill] sm:$0xff] }
 0x250   :  { %v2717_v36 = vpop.eup %2716  ;;  %v1281_v6 = vadd.f32 %v1225_v59, %v4786_v19  ;;  %1499 = vmatprep.subr.mxu0 %v1282_v32  ;;  %v1102_v35 = vmul.f32 0.6931472, %v2715_v23  ;;  %v1243_v1 = vsel %vm3865_vm6, %v1240_v17, %v1237_v51  ;;  %v4790_v7 = vmax.f32 %v3680_v9, 0.0  ;;  %v4805_v32 = vld [vmem:[#allocation38_spill] sm:$0xff] }
 0x251   :  { %v1246_v31 = vmul.f32 0.6931472, %v2717_v36  ;;  %v1274_v25 = vadd.f32 %v1162_v21, %v4789_v47  ;;  %v1105_v48 = vmul.f32 %v3782_v43, %v1104_v58  ;;  %v1014_v37 = vadd.f32 1.0, %v1013_v49  ;;  %v2719_v59 = vpop.eup %2718  ;;  %v4803_v49 = vld [vmem:[#allocation40_spill] sm:$0xff]  ;;  %v4811_v36 = vld [vmem:[#allocation35_spill] sm:$0xff] }
 0x252   :  { %1500 = vmatpush1.msra.mxu0 %v1281_v6  ;;  %v1266_v10 = vadd.f32 %v1090_v3, %v4790_v7  ;;  %v1180_v50 = vsel %vm3872_vm7, %v3870_v11, %v1174_v22  ;;  %v1016_v41 = vand.u32 2147483647, %v3798_v2  ;;  %v1032_v26 = vadd.f32 1.0, %v1031_v34  ;;  %v2721_v42 = vpop.eup %2720 }
 0x253   :  { %v1252_v5 = vsel %vm3925_vm13, %v1249_v28, %v1246_v31  ;;  %1501 = vmatprep.subr.mxu0 %v1274_v25  ;;  %v1171_v20 = vsel %vm3876_vm8, %v3837_v12, %v1165_v45  ;;  %v4791_v9 = vmax.f32 %v3728_v53, 0.0  ;;  %vm3949_vm14 = vcmp.lt.f32.partialorder %v1106_v15, 0.0004427343 }
 0x254   :  { %1502 = vmatpush1.msra.mxu0 %v1273_v63  ;;  %v1034_v58 = vand.u32 2147483647, %v3791_v33  ;;  %v1009_v11 = vsel %vm3887_vm10, %v3794_v14, %v3830_v39  ;;  %v4794_v55 = vand.u32 2147483647, %v3734_v54  ;;  %v4797_v53 = vmax.f32 %v3706_v0, 0.0  ;;  %v4813_v63 = vld [vmem:[#allocation37_spill] sm:$0xff] }
 0x255   :  { %v1284_v17 = vadd.f32 %v1252_v5, %v4791_v9  ;;  %1503 = vmatprep.subr.mxu0 %v1266_v10  ;;  %v1108_v45 = vsel %vm3949_vm14, %v1105_v48, %v1102_v35  ;;  %v4798_v54 = vmax.f32 %v3693_v8, 0.0  ;;  %v1012_v39 = vmul.f32 0.6931472, %v2719_v59  ;;  %v4814_v5 = vld [vmem:[#allocation17_spill] sm:$0xff]  ;;  %v4817_v59 = vld [vmem:[#allocation15_spill] sm:$0xff] }
 0x256   :  { %vm3960_vm15 = vcmp.lt.f32.partialorder %v4794_v55, 0.0004427343  ;;  %v1283_v18 = vadd.f32 %v1243_v1, %v4797_v53  ;;  %1504 = vmatpush1.msra.mxu0 %v3857_v29  ;;  %v1015_v0 = vmul.f32 %v3798_v2, %v1014_v37  ;;  %v4799_v57 = vmax.f32 %v3687_v46, 0.0  ;;  %v4801_v46 = vld [vmem:[#allocation39_spill] sm:$0xff]  ;;  %v4018_v37 = vpop.permute.xlu1 %1702  ;;  %v4818_v55 = vld [vmem:[#allocation5_spill] sm:$0xff]  ;;  %v4819_v53 = vld [vmem:[#allocation16_spill] sm:$0xff] }
 0x257   :  { %v1099_v30 = vsel %vm3960_vm15, %v3805_v40, %v3843_v13  ;;  %1588 = vmatprep.subr.mxu1 %v1284_v17  ;;  %v1276_v14 = vadd.f32 %v1180_v50, %v4798_v54  ;;  %vm1017_vm1 = vcmp.lt.f32.partialorder %v1016_v41, 0.0004427343  ;;  %v1030_v23 = vmul.f32 0.6931472, %v2721_v42  ;;  %v4816_v17 = vld [vmem:[#allocation9_spill] sm:$0xff] }
 0x258   :  { %v1275_v44 = vadd.f32 %v1171_v20, %v4799_v57  ;;  %1589 = vmatpush1.msra.mxu1 %v1283_v18  ;;  %v1033_v51 = vmul.f32 %v3791_v33, %v1032_v26  ;;  %v1027_v40 = vsel %vm3911_vm12, %v3775_v60, %v3819_v27  ;;  %v4800_v8 = vmax.f32 %v3697_v62, 0.0  ;;  %v4807_v60 = vld [vmem:[#allocation41_spill] sm:$0xff]  ;;  %v4815_v26 = vld [vmem:[#allocation7_spill] sm:$0xff]  ;;  %v4822_v57 = vld [vmem:[#allocation8_spill] sm:$0xff] }
 0x259   :  { %1590 = vmatprep.subr.mxu1 %v1276_v14  ;;  %v1018_v13 = vsel %vm1017_vm1, %v1015_v0, %v1012_v39  ;;  %vm1035_vm2 = vcmp.lt.f32.partialorder %v1034_v58, 0.0004427343  ;;  %v811_v2 = vmax.f32 %v3664_v38, 0.0  ;;  %v4802_v61 = vmax.f32 %v4801_v46, 0.0  ;;  %v4809_v38 = vld [vmem:[#allocation34_spill] sm:$0xff]  ;;  %v4023_v58 = vpop.permute.xlu0 %1697 }
 0x25a   :  { %v1268_v29 = vadd.f32 %v1108_v45, %v4800_v8  ;;  %1591 = vmatpush1.msra.mxu1 %v1275_v44  ;;  %v4804_v4 = vmax.f32 %v4803_v49, 0.0  ;;  %v1036_v24 = vsel %vm1035_vm2, %v1033_v51, %v1030_v23  ;;  %v4806_v22 = vmax.f32 %v4805_v32, 0.0  ;;  %v4821_v14 = vld [vmem:[#allocation6_spill] sm:$0xff]  ;;  %v4823_v23 = vld [vmem:[#allocation3_spill] sm:$0xff] }
 0x25b   :  { %v1267_v21 = vadd.f32 %v1099_v30, %v4802_v61  ;;  %v4808_v27 = vmax.f32 %v4807_v60, 0.0  ;;  %v1259_v3 = vadd.f32 %v1027_v40, %v811_v2  ;;  %v4810_v34 = vmov 0.0   ;;  %v4820_v30 = vld [vmem:[#allocation13_spill] sm:$0xff]  ;;  %v4824_v40 = vld [vmem:[#allocation14_spill] sm:$0xff]  ;;  %v4825_v2 = vld [vmem:[#allocation11_spill] sm:$0xff] }
 0x25c   :  { %v1258_v33 = vadd.f32 %v1018_v13, %v4804_v4  ;;  %v1257_v52 = vadd.f32 %v1009_v11, %v4806_v22  ;;  %1592 = vmatprep.subr.mxu1 %v1268_v29  ;;  %v4036_v13 = vpop.permute.xlu1 %1692  ;;  %v4826_v61 = vld [vmem:[#allocation4_spill] sm:$0xff]  ;;  %v4828_v60 = vld [vmem:[#allocation2_spill] sm:$0xff]  ;;  %vm2413_vm8 = vcmask 15360  }
 0x25d   :  { %v1260_v62 = vadd.f32 %v1036_v24, %v4808_v27  ;;  %1593 = vmatpush1.msra.mxu1 %v1267_v21 }
 0x25e   :  { %1505 = vmatprep.subr.mxu0 %v1258_v33  ;;  %v4827_v33 = vld [vmem:[#allocation12_spill] sm:$0xff] }
 0x25f   :  { %1594 = vmatprep.subr.mxu1 %v1260_v62  ;;  %1506 = vmatpush1.msra.mxu0 %v1257_v52  ;;  %v4045_v52 = vpop.permute.xlu0 %1687 }
 0x260   :  { %1595 = vmatpush1.msra.mxu1 %v1259_v3  ;;  %2570 = vmatmul.mubr.msk.f32.vlgmr.msra.gmra.mxu0 %vm436_vm0, %v4809_v38 }
 0x261   :  { %2574 = vmatmul.mubr.msk.f32.vlgmr.msra.gmra.mxu1 %vm436_vm0, %v4809_v38  ;;  %1545 = vmatprep.mubr.f32.mxu0 %v4810_v34  ;;  %v4829_v38 = vld [vmem:[#allocation10_spill] sm:$0xff] }
 0x262   :  { %1634 = vmatprep.mubr.f32.mxu1 %v4810_v34 }
 0x264   :  { %2571 = vmatmul.mubr.msk.f32.gmra.mxu0 %vm436_vm0, %v4811_v36 }
 0x265   :  { %2575 = vmatmul.mubr.msk.f32.gmra.mxu1 %vm436_vm0, %v4811_v36  ;;  %1551 = vmatprep.mubr.f32.mxu0 %v4810_v34 }
 0x266   :  { %1640 = vmatprep.mubr.f32.mxu1 %v4810_v34 }
 0x268   :  { %2572 = vmatmul.mubr.msk.f32.gmra.mxu0 %vm436_vm0, %v4812_v56 }
 0x269   :  { %2576 = vmatmul.mubr.msk.f32.gmra.mxu1 %vm436_vm0, %v4812_v56  ;;  %1557 = vmatprep.mubr.f32.mxu0 %v4810_v34 }
 0x26a   :  { %1646 = vmatprep.mubr.f32.mxu1 %v4810_v34 }
 0x26c   :  { %2573 = vmatmul.mubr.msk.f32.gmra.mxu0 %vm436_vm0, %v4813_v63 }
 0x26d   :  { %2577 = vmatmul.mubr.msk.f32.gmra.mxu1 %vm436_vm0, %v4813_v63  ;;  %1809 = vmatprep.mubr.f32.mxu0 %v4810_v34 }
 0x26e   :  { %1880 = vmatprep.mubr.f32.mxu1 %v4810_v34 }
 0x2b4   :  { %v1363_v19 = vpop.f32.mrf.mxu0 }
 0x2b5   :  { %v1653_v46 = vadd.f32 %v1363_v19, %v4825_v2 }
 0x2b6   :  { %v1365_v6 = vpop.f32.mrf.mxu0 }
 0x2b7   :  { %v1654_v51 = vadd.f32 %v1365_v6, %v4823_v23  ;;  %v1705_v19 = vadd.f32 %v4045_v52, %v1653_v46  ;;  %v4840_v46 = vld [vmem:[#allocation29_spill] sm:$0xff] }
 0x2b8   :  { %v1452_v16 = vpop.f32.mrf.mxu1  ;;  %v1369_v15 = vpop.f32.mrf.mxu0 }
 0x2b9   :  { %v1661_v54 = vadd.f32 %v1369_v15, %v4820_v30  ;;  %v1655_v36 = vadd.f32 %v1452_v16, %v4829_v38  ;;  %v1706_v56 = vadd.f32 %v4045_v52, %v1654_v51  ;;  %v4058_v15 = vld [vmem:[%s4636_s1 + $0x40] sm:$0x3]  ;;  %v4834_v30 = vld [vmem:[#allocation31_spill] sm:$0xff]  ;;  %v4838_v51 = vld [vmem:[#allocation21_spill] sm:$0xff] }
 0x2ba   :  { %v1454_v31 = vpop.f32.mrf.mxu1  ;;  %v1371_v28 = vpop.f32.mrf.mxu0 }
 0x2bb   :  { %v1662_v12 = vadd.f32 %v1371_v28, %v4818_v55  ;;  %v1656_v27 = vadd.f32 %v1454_v31, %v4828_v60  ;;  %v1713_v62 = vadd.f32 %v4036_v13, %v1661_v54  ;;  %v1707_v28 = vadd.f32 %v4045_v52, %v1655_v36  ;;  %v4831_v55 = vld [vmem:[#allocation23_spill] sm:$0xff] }
 0x2bc   :  { %v1458_v47 = vpop.f32.mrf.mxu1  ;;  %v1375_v25 = vpop.f32.mrf.mxu0 }
 0x2bd   :  { %v1669_v11 = vadd.f32 %v1375_v25, %v4817_v59  ;;  %v1663_v24 = vadd.f32 %v1458_v47, %v4827_v33  ;;  %v1714_v32 = vadd.f32 %v4036_v13, %v1662_v12  ;;  %v1708_v16 = vadd.f32 %v4045_v52, %v1656_v27 }
 0x2be   :  { %v1460_v35 = vpop.f32.mrf.mxu1  ;;  %v1377_v1 = vpop.f32.mrf.mxu0 }
 0x2bf   :  { %v1670_v20 = vadd.f32 %v1377_v1, %v4815_v26  ;;  %v1664_v21 = vadd.f32 %v1460_v35, %v4826_v61  ;;  %v1721_v49 = vadd.f32 %v4023_v58, %v1669_v11  ;;  %v1715_v31 = vadd.f32 %v4036_v13, %v1663_v24  ;;  %v4842_v24 = vld [vmem:[#allocation19_spill] sm:$0xff] }
 0x2c0   :  { %v1464_v7 = vpop.f32.mrf.mxu1  ;;  %v1381_v10 = vpop.f32.mrf.mxu0 }
 0x2c1   :  { %v1677_v50 = vadd.f32 %v1381_v10, %v4814_v5  ;;  %v1671_v8 = vadd.f32 %v1464_v7, %v4824_v40  ;;  %v1722_v29 = vadd.f32 %v4023_v58, %v1670_v20  ;;  %v1716_v6 = vadd.f32 %v4036_v13, %v1664_v21  ;;  %v4841_v21 = vld [vmem:[#allocation20_spill] sm:$0xff] }
 0x2c2   :  { %v1466_v48 = vpop.f32.mrf.mxu1  ;;  %v1383_v41 = vpop.f32.mrf.mxu0 }
 0x2c3   :  { %v1678_v43 = vadd.f32 %v1383_v41, %v4816_v17  ;;  %v1672_v39 = vadd.f32 %v1466_v48, %v4821_v14  ;;  %v1729_v0 = vadd.f32 %v4018_v37, %v1677_v50  ;;  %v1723_v63 = vadd.f32 %v4023_v58, %v1671_v8  ;;  %v4835_v14 = vld [vmem:[#allocation22_spill] sm:$0xff] }
 0x2c4   :  { %v1470_v9 = vpop.f32.mrf.mxu1  ;;  %v4839_v8 = vld [vmem:[#allocation30_spill] sm:$0xff] }
 0x2c5   :  { %v1679_v18 = vadd.f32 %v1470_v9, %v4819_v53  ;;  %v1730_v45 = vadd.f32 %v4018_v37, %v1678_v43  ;;  %v1724_v3 = vadd.f32 %v4023_v58, %v1672_v39  ;;  %v4830_v43 = vld [vmem:[#allocation33_spill] sm:$0xff] }
 0x2c6   :  { %v1472_v42 = vpop.f32.mrf.mxu1 }
 0x2c7   :  { %v1680_v44 = vadd.f32 %v1472_v42, %v4822_v57  ;;  %1769 = vmatprep.subr.mxu0 %v1730_v45  ;;  %v1731_v22 = vadd.f32 %v4018_v37, %v1679_v18  ;;  %v4833_v18 = vld [vmem:[#allocation25_spill] sm:$0xff] }
 0x2c8   :  { %1770 = vmatpush1.msra.mxu0 %v1729_v0  ;;  %v4836_v0 = vld [vmem:[#allocation24_spill] sm:$0xff] }
 0x2c9   :  { %v1732_v4 = vadd.f32 %v4018_v37, %v1680_v44  ;;  %1771 = vmatprep.subr.mxu0 %v1722_v29  ;;  %v4837_v44 = vld [vmem:[#allocation27_spill] sm:$0xff] }
 0x2ca   :  { %1772 = vmatpush1.msra.mxu0 %v1721_v49 }
 0x2cb   :  { %1840 = vmatprep.subr.mxu1 %v1732_v4  ;;  %1773 = vmatprep.subr.mxu0 %v1714_v32 }
 0x2cc   :  { %1841 = vmatpush1.msra.mxu1 %v1731_v22  ;;  %1774 = vmatpush1.msra.mxu0 %v1713_v62  ;;  %v4843_v22 = vld [vmem:[#allocation28_spill] sm:$0xff] }
 0x2cd   :  { %1842 = vmatprep.subr.mxu1 %v1724_v3  ;;  %1775 = vmatprep.subr.mxu0 %v1706_v56  ;;  %v4844_v3 = vld [vmem:[#allocation18_spill] sm:$0xff] }
 0x2ce   :  { %1843 = vmatpush1.msra.mxu1 %v1723_v63  ;;  %1776 = vmatpush1.msra.mxu0 %v1705_v19  ;;  %v4845_v63 = vld [vmem:[#allocation26_spill] sm:$0xff] }
 0x2cf   :  { %1844 = vmatprep.subr.mxu1 %v1716_v6  ;;  %2578 = vmatmul.mubr.msk.f32.vlgmr.msra.gmra.mxu0 %vm436_vm0, %v4058_v15 }
 0x2d0   :  { %1845 = vmatpush1.msra.mxu1 %v1715_v31  ;;  %1951 = vmatprep.mubr.f32.mxu0 %v4810_v34 }
 0x2d1   :  { %1846 = vmatprep.subr.mxu1 %v1708_v16 }
 0x2d2   :  { %1847 = vmatpush1.msra.mxu1 %v1707_v28 }
 0x2d3   :  { %2579 = vmatmul.mubr.msk.f32.vlgmr.msra.gmra.mxu1 %vm436_vm0, %v4058_v15 }
 0x2d4   :  { %2022 = vmatprep.mubr.f32.mxu1 %v4810_v34  ;;  %v4832_v34 = vld [vmem:[#allocation32_spill] sm:$0xff] }
 0x320   :  { %v1541_v47 = vpop.f32.mrf.mxu0 }
 0x321   :  { %v1630_v25 = vpop.f32.mrf.mxu1  ;;  %v1657_v23 = vadd.f32 %v1541_v47, %v4837_v44 }
 0x322   :  { %v1543_v35 = vpop.f32.mrf.mxu0  ;;  %v1659_v19 = vadd.f32 %v1630_v25, %v4845_v63 }
 0x323   :  { %v1632_v1 = vpop.f32.mrf.mxu1  ;;  %v1658_v32 = vadd.f32 %v1543_v35, %v4842_v24  ;;  %v1709_v25 = vadd.f32 %v4045_v52, %v1657_v23 }
 0x324   :  { %v1547_v7 = vpop.f32.mrf.mxu0  ;;  %v1660_v38 = vadd.f32 %v1632_v1, %v4844_v3 }
 0x325   :  { %v1636_v10 = vpop.f32.mrf.mxu1  ;;  %v1665_v61 = vadd.f32 %v1547_v7, %v4840_v46  ;;  %v1710_v28 = vadd.f32 %v4045_v52, %v1658_v32 }
 0x326   :  { %v1549_v48 = vpop.f32.mrf.mxu0  ;;  %v1667_v60 = vadd.f32 %v1636_v10, %v4843_v22  ;;  %v1712_v35 = vadd.f32 %v4045_v52, %v1660_v38 }
 0x327   :  { %v1638_v5 = vpop.f32.mrf.mxu1  ;;  %v1666_v40 = vadd.f32 %v1549_v48, %v4838_v51  ;;  %v1717_v16 = vadd.f32 %v4036_v13, %v1665_v61 }
 0x328   :  { %v1553_v50 = vpop.f32.mrf.mxu0  ;;  %v1668_v49 = vadd.f32 %v1638_v5, %v4841_v21  ;;  %v1719_v47 = vadd.f32 %v4036_v13, %v1667_v60 }
 0x329   :  { %v1642_v41 = vpop.f32.mrf.mxu1  ;;  %v1673_v54 = vadd.f32 %v1553_v50, %v4834_v30  ;;  %v1718_v6 = vadd.f32 %v4036_v13, %v1666_v40 }
 0x32a   :  { %v1555_v26 = vpop.f32.mrf.mxu0  ;;  %v1675_v29 = vadd.f32 %v1642_v41, %v4839_v8 }
 0x32b   :  { %v1644_v20 = vpop.f32.mrf.mxu1  ;;  %v1674_v12 = vadd.f32 %v1555_v26, %v4831_v55  ;;  %v1725_v36 = vadd.f32 %v4023_v58, %v1673_v54 }
 0x32c   :  { %v1559_v9 = vpop.f32.mrf.mxu0  ;;  %v1676_v39 = vadd.f32 %v1644_v20, %v4835_v14  ;;  %v1727_v31 = vadd.f32 %v4023_v58, %v1675_v29 }
 0x32d   :  { %v1648_v17 = vpop.f32.mrf.mxu1  ;;  %v1681_v59 = vadd.f32 %v1559_v9, %v4830_v43  ;;  %v1726_v27 = vadd.f32 %v4023_v58, %v1674_v12 }
 0x32e   :  { %v1561_v11 = vpop.f32.mrf.mxu0  ;;  %v1683_v53 = vadd.f32 %v1648_v17, %v4832_v34  ;;  %v1728_v56 = vadd.f32 %v4023_v58, %v1676_v39  ;;  %v1711_v58 = vadd.f32 %v4045_v52, %v1659_v19 }
 0x32f   :  { %v1682_v45 = vadd.f32 %v1561_v11, %v4833_v18  ;;  %v1650_v42 = vpop.f32.mrf.mxu1  ;;  %v1733_v4 = vadd.f32 %v4018_v37, %v1681_v59 }
 0x330   :  { %v1684_v57 = vadd.f32 %v1650_v42, %v4836_v0  ;;  %v1735_v62 = vadd.f32 %v4018_v37, %v1683_v53 }
 0x331   :  { %v1734_v2 = vadd.f32 %v4018_v37, %v1682_v45 }
 0x332   :  { %v1736_v33 = vadd.f32 %v4018_v37, %v1684_v57  ;;  %v1720_v37 = vadd.f32 %v4036_v13, %v1668_v49  ;;  %v4105_v13 = vpop.permute.xlu1 %1739 }
 0x333   :  { %1911 = vmatprep.subr.mxu0 %v1734_v2 }
 0x334   :  { %1982 = vmatprep.subr.mxu1 %v1736_v33  ;;  %1912 = vmatpush1.msra.mxu0 %v1733_v4 }
 0x335   :  { %1983 = vmatpush1.msra.mxu1 %v1735_v62  ;;  %1913 = vmatprep.subr.mxu0 %v1726_v27 }
 0x336   :  { %1984 = vmatprep.subr.mxu1 %v1728_v56  ;;  %1914 = vmatpush1.msra.mxu0 %v1725_v36 }
 0x337   :  { %1985 = vmatpush1.msra.mxu1 %v1727_v31  ;;  %1915 = vmatprep.subr.mxu0 %v1718_v6 }
 0x338   :  { %1986 = vmatprep.subr.mxu1 %v1720_v37  ;;  %1916 = vmatpush1.msra.mxu0 %v1717_v16 }
 0x339   :  { %1987 = vmatpush1.msra.mxu1 %v1719_v47  ;;  %1917 = vmatprep.subr.mxu0 %v1710_v28 }
 0x33a   :  { %1988 = vmatprep.subr.mxu1 %v1712_v35  ;;  %1918 = vmatpush1.msra.mxu0 %v1709_v25 }
 0x33b   :  { %1989 = vmatpush1.msra.mxu1 %v1711_v58  ;;  %2580 = vmatmul.mubr.msk.f32.vlgmr.msra.gmra.mxu0 %vm436_vm0, %v4058_v15 }
 0x33c   :  { %2581 = vmatmul.mubr.msk.f32.vlgmr.msra.gmra.mxu1 %vm436_vm0, %v4058_v15 }
 0x38f   :  { %v1811_v1 = vpop.f32.mrf.mxu0 }
 0x390   :  { %v1812_v7 = vadd.f32 %v1811_v1, %v4105_v13 }
 0x391   :  { %v1813_v10 = vpop.f32.mrf.mxu0 }
 0x392   :  { %v2037_v48 = vand.u32 2147483647, %v1812_v7  ;;  %v1814_v52 = vadd.f32 %v1813_v10, %v4105_v13  ;;  %v2029_v14 = vmax.f32 %v1812_v7, 0.0 }
 0x393   :  { %v1882_v34 = vpop.f32.mrf.mxu1 }
 0x394   :  { %v2045_v5 = vsub.f32 0.0, %v2037_v48  ;;  %v2038_v50 = vand.u32 2147483647, %v1814_v52  ;;  %v1883_v51 = vadd.f32 %v1882_v34, %v4105_v13  ;;  %v2030_v40 = vmax.f32 %v1814_v52, 0.0 }
 0x395   :  { %v1884_v44 = vpop.f32.mrf.mxu1 }
 0x396   :  { %v2053_v41 = vmul.f32 1.442695, %v2045_v5  ;;  %v2046_v26 = vsub.f32 0.0, %v2038_v50  ;;  %v1885_v46 = vadd.f32 %v1884_v44, %v4105_v13  ;;  %v2039_v61 = vand.u32 2147483647, %v1883_v51 }
 0x397   :  { %v2031_v35 = vmax.f32 %v1883_v51, 0.0 }
 0x398   :  { %2722 = vpow2.f32 %v2053_v41  ;;  %v2055_v20 = vmul.f32 1.442695, %v2046_v26  ;;  %v2040_v49 = vand.u32 2147483647, %v1885_v46  ;;  %v2047_v4 = vsub.f32 0.0, %v2039_v61 }
 0x399   :  { %v2032_v7 = vmax.f32 %v1885_v46, 0.0 }
 0x39a   :  { %2724 = vpow2.f32 %v2055_v20  ;;  %v2048_v33 = vsub.f32 0.0, %v2040_v49  ;;  %v2057_v24 = vmul.f32 1.442695, %v2047_v4 }
 0x39c   :  { %v2059_v32 = vmul.f32 1.442695, %v2048_v33 }
 0x3a5   :  { %v2723_v9 = vpop.eup %2722 }
 0x3a6   :  { %v2069_v17 = vadd.f32 1.0, %v2723_v9  ;;  %v2072_v59 = vmul.f32 -0.5, %v2723_v9  ;;  %v2075_v12 = vand.u32 2147483647, %v2723_v9 }
 0x3a7   :  { %v2725_v43 = vpop.eup %2724 }
 0x3a8   :  { %2726 = vlog2.f32 %v2069_v17  ;;  %v2078_v15 = vadd.f32 1.0, %v2725_v43  ;;  %v2081_v11 = vmul.f32 -0.5, %v2725_v43  ;;  %v2073_v55 = vadd.f32 1.0, %v2072_v59 }
 0x3a9   :  { %v2084_v45 = vand.u32 2147483647, %v2725_v43  ;;  %vm2076_vm0 = vcmp.lt.f32.partialorder %v2075_v12, 0.0004427343 }
 0x3aa   :  { %2728 = vlog2.f32 %v2078_v15  ;;  %v2082_v53 = vadd.f32 1.0, %v2081_v11  ;;  %v2074_v30 = vmul.f32 %v2723_v9, %v2073_v55 }
 0x3ab   :  { %vm2085_vm3 = vcmp.lt.f32.partialorder %v2084_v45, 0.0004427343  ;;  %2730 = vpow2.f32 %v2057_v24 }
 0x3ac   :  { %v2083_v57 = vmul.f32 %v2725_v43, %v2082_v53  ;;  %2732 = vpow2.f32 %v2059_v32 }
 0x3b5   :  { %v2727_v18 = vpop.eup %2726 }
 0x3b6   :  { %v2071_v42 = vmul.f32 0.6931472, %v2727_v18 }
 0x3b7   :  { %v2729_v54 = vpop.eup %2728 }
 0x3b8   :  { %v2077_v39 = vsel %vm2076_vm0, %v2074_v30, %v2071_v42  ;;  %v2080_v0 = vmul.f32 0.6931472, %v2729_v54  ;;  %v2731_v22 = vpop.eup %2730 }
 0x3b9   :  { %v2141_v23 = vadd.f32 %v2077_v39, %v2029_v14  ;;  %v2733_v60 = vpop.eup %2732  ;;  %v2087_v27 = vadd.f32 1.0, %v2731_v22  ;;  %v2090_v3 = vmul.f32 -0.5, %v2731_v22  ;;  %v2093_v19 = vand.u32 2147483647, %v2731_v22 }
 0x3ba   :  { %v2086_v8 = vsel %vm2085_vm3, %v2083_v57, %v2080_v0  ;;  %v2096_v62 = vadd.f32 1.0, %v2733_v60  ;;  %v2099_v38 = vmul.f32 -0.5, %v2733_v60  ;;  %v2102_v16 = vand.u32 2147483647, %v2733_v60 }
 0x3bb   :  { %v2582_v29 = vadd.f32 -0.6931472, %v2141_v23  ;;  %v2142_v2 = vadd.f32 %v2086_v8, %v2030_v40  ;;  %2734 = vlog2.f32 %v2087_v27  ;;  %v2091_v56 = vadd.f32 1.0, %v2090_v3 }
 0x3bc   :  { %2736 = vlog2.f32 %v2096_v62  ;;  %v2100_v31 = vadd.f32 1.0, %v2099_v38  ;;  %vm2094_vm4 = vcmp.lt.f32.partialorder %v2093_v19, 0.0004427343  ;;  %vm2103_vm5 = vcmp.lt.f32.partialorder %v2102_v16, 0.0004427343 }
 0x3bd   :  { %v2583_v21 = vadd.f32 -0.6931472, %v2142_v2  ;;  %2157 = vxpose.xlu0.b32.start.end [1/1] (short) %v2582_v29, 128  ;;  %v2092_v37 = vmul.f32 %v2731_v22, %v2091_v56 }
 0x3be   :  { %v2101_v25 = vmul.f32 %v2733_v60, %v2100_v31 }
 0x3bf   :  { %2189 = vxpose.xlu1.b32.start.end [1/1] (short) %v2583_v21, 128 }
 0x3c8   :  { %v2735_v36 = vpop.eup %2734 }
 0x3c9   :  { %v2737_v63 = vpop.eup %2736  ;;  %v2089_v6 = vmul.f32 0.6931472, %v2735_v36 }
 0x3ca   :  { %v2098_v28 = vmul.f32 0.6931472, %v2737_v63 }
 0x3cb   :  { %v2095_v47 = vsel %vm2094_vm4, %v2092_v37, %v2089_v6 }
 0x3cc   :  { %v2104_v58 = vsel %vm2103_vm5, %v2101_v25, %v2098_v28  ;;  %v2143_v1 = vadd.f32 %v2095_v47, %v2031_v35 }
 0x3cd   :  { %v2144_v10 = vadd.f32 %v2104_v58, %v2032_v7 }
 0x3ce   :  { %v2584_v48 = vadd.f32 -0.6931472, %v2143_v1 }
 0x3cf   :  { %v2585_v52 = vadd.f32 -0.6931472, %v2144_v10 }
 0x3fa   :  { %2221 = vxpose.xlu0.b32.start.end [1/1] (short) %v2584_v48, 128 }
 0x3fb   :  { %v1953_v5 = vpop.f32.mrf.mxu0 }
 0x3fc   :  { %2253 = vxpose.xlu1.b32.start.end [1/1] (short) %v2585_v52, 128  ;;  %v1954_v50 = vadd.f32 %v1953_v5, %v4105_v13  ;;  %v2024_v8 = vpop.f32.mrf.mxu1 }
 0x3fd   :  { %v1955_v41 = vpop.f32.mrf.mxu0  ;;  %v4114_v4 = vadd.f32 %v2024_v8, %v4105_v13 }
 0x3fe   :  { %v2041_v26 = vand.u32 2147483647, %v1954_v50  ;;  %v1956_v20 = vadd.f32 %v1955_v41, %v4105_v13  ;;  %v2033_v40 = vmax.f32 %v1954_v50, 0.0  ;;  %v2026_v21 = vpop.f32.mrf.mxu1 }
 0x3ff   :  { %v4117_v24 = vadd.f32 %v2026_v21, %v4105_v13  ;;  %v2043_v32 = vand.u32 2147483647, %v4114_v4 }
 0x400   :  { %v2049_v9 = vsub.f32 0.0, %v2041_v26  ;;  %v2042_v17 = vand.u32 2147483647, %v1956_v20  ;;  %v2034_v46 = vmax.f32 %v1956_v20, 0.0 }
 0x401   :  { %v2044_v22 = vand.u32 2147483647, %v4117_v24  ;;  %v2051_v27 = vsub.f32 0.0, %v2043_v32 }
 0x402   :  { %v2061_v43 = vmul.f32 1.442695, %v2049_v9  ;;  %v2050_v15 = vsub.f32 0.0, %v2042_v17 }
 0x403   :  { %v2052_v13 = vsub.f32 0.0, %v2044_v22  ;;  %v2065_v38 = vmul.f32 1.442695, %v2051_v27 }
 0x404   :  { %2738 = vpow2.f32 %v2061_v43  ;;  %v2063_v59 = vmul.f32 1.442695, %v2050_v15 }
 0x405   :  { %v2067_v56 = vmul.f32 1.442695, %v2052_v13 }
 0x406   :  { %2740 = vpow2.f32 %v2063_v59 }
 0x411   :  { %v2739_v11 = vpop.eup %2738 }
 0x412   :  { %v2105_v55 = vadd.f32 1.0, %v2739_v11  ;;  %v2108_v53 = vmul.f32 -0.5, %v2739_v11  ;;  %v2111_v54 = vand.u32 2147483647, %v2739_v11 }
 0x413   :  { %v2741_v12 = vpop.eup %2740 }
 0x414   :  { %v2114_v34 = vadd.f32 1.0, %v2741_v12  ;;  %2742 = vlog2.f32 %v2105_v55  ;;  %v2117_v18 = vmul.f32 -0.5, %v2741_v12  ;;  %v2109_v42 = vadd.f32 1.0, %v2108_v53 }
 0x415   :  { %v2120_v0 = vand.u32 2147483647, %v2741_v12  ;;  %vm2112_vm6 = vcmp.lt.f32.partialorder %v2111_v54, 0.0004427343 }
 0x416   :  { %2744 = vlog2.f32 %v2114_v34  ;;  %v2118_v39 = vadd.f32 1.0, %v2117_v18  ;;  %v2110_v57 = vmul.f32 %v2739_v11, %v2109_v42 }
 0x417   :  { %vm2121_vm7 = vcmp.lt.f32.partialorder %v2120_v0, 0.0004427343  ;;  %2746 = vpow2.f32 %v2065_v38 }
 0x418   :  { %v2119_v51 = vmul.f32 %v2741_v12, %v2118_v39  ;;  %2748 = vpow2.f32 %v2067_v56 }
 0x421   :  { %v2743_v45 = vpop.eup %2742 }
 0x422   :  { %v2107_v14 = vmul.f32 0.6931472, %v2743_v45 }
 0x423   :  { %v2745_v30 = vpop.eup %2744 }
 0x424   :  { %v2116_v44 = vmul.f32 0.6931472, %v2745_v30  ;;  %v2113_v23 = vsel %vm2112_vm6, %v2110_v57, %v2107_v14  ;;  %v2747_v25 = vpop.eup %2746  ;;  %v2035_v57 = vmax.f32 %v4114_v4, 0.0 }
 0x425   :  { %v2145_v2 = vadd.f32 %v2113_v23, %v2033_v40  ;;  %v2749_v58 = vpop.eup %2748  ;;  %v2123_v1 = vadd.f32 1.0, %v2747_v25  ;;  %v2126_v20 = vmul.f32 -0.5, %v2747_v25  ;;  %v2129_v12 = vand.u32 2147483647, %v2747_v25 }
 0x426   :  { %v2122_v29 = vsel %vm2121_vm7, %v2119_v51, %v2116_v44  ;;  %v2132_v10 = vadd.f32 1.0, %v2749_v58  ;;  %v2135_v17 = vmul.f32 -0.5, %v2749_v58  ;;  %v2138_v45 = vand.u32 2147483647, %v2749_v58 }
 0x427   :  { %v2146_v61 = vadd.f32 %v2122_v29, %v2034_v46  ;;  %v2586_v49 = vadd.f32 -0.6931472, %v2145_v2  ;;  %2750 = vlog2.f32 %v2123_v1  ;;  %v2127_v59 = vadd.f32 1.0, %v2126_v20 }
 0x428   :  { %2752 = vlog2.f32 %v2132_v10  ;;  %v2136_v53 = vadd.f32 1.0, %v2135_v17  ;;  %vm2130_vm9 = vcmp.lt.f32.partialorder %v2129_v12, 0.0004427343  ;;  %vm2139_vm10 = vcmp.lt.f32.partialorder %v2138_v45, 0.0004427343 }
 0x429   :  { %v2587_v33 = vadd.f32 -0.6931472, %v2146_v61  ;;  %v2128_v42 = vmul.f32 %v2747_v25, %v2127_v59  ;;  %v2036_v40 = vmax.f32 %v4117_v24, 0.0 }
 0x42a   :  { %v2137_v39 = vmul.f32 %v2749_v58, %v2136_v53 }
 0x434   :  { %v2751_v15 = vpop.eup %2750 }
 0x435   :  { %v2753_v55 = vpop.eup %2752  ;;  %v2125_v34 = vmul.f32 0.6931472, %v2751_v15 }
 0x436   :  { %v2134_v30 = vmul.f32 0.6931472, %v2753_v55 }
 0x437   :  { %2285 = vxpose.xlu0.b32.start.end [1/1] (short) %v2586_v49, 128  ;;  %v2131_v14 = vsel %vm2130_vm9, %v2128_v42, %v2125_v34 }
 0x438   :  { %v2140_v44 = vsel %vm2139_vm10, %v2137_v39, %v2134_v30  ;;  %v2147_v51 = vadd.f32 %v2131_v14, %v2035_v57 }
 0x439   :  { %2317 = vxpose.xlu1.b32.start.end [1/1] (short) %v2587_v33, 128  ;;  %v2173_v60 = vpop.trf.xlu0  ;;  %v2148_v29 = vadd.f32 %v2140_v44, %v2036_v40 }
 0x43a   :  { %2414 = vst.msk [vmem:[%s4638_s3] sm:$0xff] %vm2413_vm8, %v2173_v60  ;;  %v2588_v46 = vadd.f32 -0.6931472, %v2147_v51 }
 0x43b   :  { %v2205_v62 = vpop.trf.xlu1  ;;  %v2589_v21 = vadd.f32 -0.6931472, %v2148_v29 }
 0x43c   :  { %2430 = vst.msk [vmem:[%s4638_s3 + $0x80] sm:$0xff] %vm2413_vm8, %v2205_v62 }
 0x43d   :  { %v2174_v3 = vpop.trf.xlu0 }
 0x43e   :  { %2415 = vst.msk [vmem:[%s4638_s3 + $0x8] sm:$0xff] %vm2413_vm8, %v2174_v3 }
 0x43f   :  { %v2206_v36 = vpop.trf.xlu1 }
 0x440   :  { %2431 = vst.msk [vmem:[%s4638_s3 + $0x88] sm:$0xff] %vm2413_vm8, %v2206_v36 }
 0x441   :  { %v2175_v63 = vpop.trf.xlu0 }
 0x442   :  { %2416 = vst.msk [vmem:[%s4638_s3 + $0x10] sm:$0xff] %vm2413_vm8, %v2175_v63 }
 0x443   :  { %v2207_v19 = vpop.trf.xlu1 }
 0x444   :  { %2432 = vst.msk [vmem:[%s4638_s3 + $0x90] sm:$0xff] %vm2413_vm8, %v2207_v19 }
 0x445   :  { %v2176_v6 = vpop.trf.xlu0 }
 0x446   :  { %2417 = vst.msk [vmem:[%s4638_s3 + $0x18] sm:$0xff] %vm2413_vm8, %v2176_v6 }
 0x447   :  { %v2208_v31 = vpop.trf.xlu1 }
 0x448   :  { %2433 = vst.msk [vmem:[%s4638_s3 + $0x98] sm:$0xff] %vm2413_vm8, %v2208_v31 }
 0x449   :  { %v2177_v16 = vpop.trf.xlu0 }
 0x44a   :  { %2418 = vst.msk [vmem:[%s4638_s3 + $0x20] sm:$0xff] %vm2413_vm8, %v2177_v16 }
 0x44b   :  { %v2209_v37 = vpop.trf.xlu1 }
 0x44c   :  { %2434 = vst.msk [vmem:[%s4638_s3 + $0xa0] sm:$0xff] %vm2413_vm8, %v2209_v37 }
 0x44d   :  { %v2178_v28 = vpop.trf.xlu0 }
 0x44e   :  { %2419 = vst.msk [vmem:[%s4638_s3 + $0x28] sm:$0xff] %vm2413_vm8, %v2178_v28 }
 0x44f   :  { %v2210_v47 = vpop.trf.xlu1 }
 0x450   :  { %2435 = vst.msk [vmem:[%s4638_s3 + $0xa8] sm:$0xff] %vm2413_vm8, %v2210_v47 }
 0x451   :  { %v2179_v35 = vpop.trf.xlu0 }
 0x452   :  { %2420 = vst.msk [vmem:[%s4638_s3 + $0x30] sm:$0xff] %vm2413_vm8, %v2179_v35 }
 0x453   :  { %v2211_v7 = vpop.trf.xlu1 }
 0x454   :  { %2436 = vst.msk [vmem:[%s4638_s3 + $0xb0] sm:$0xff] %vm2413_vm8, %v2211_v7 }
 0x455   :  { %v2180_v48 = vpop.trf.xlu0 }
 0x456   :  { %2421 = vst.msk [vmem:[%s4638_s3 + $0x38] sm:$0xff] %vm2413_vm8, %v2180_v48 }
 0x457   :  { %v2212_v52 = vpop.trf.xlu1 }
 0x458   :  { %2437 = vst.msk [vmem:[%s4638_s3 + $0xb8] sm:$0xff] %vm2413_vm8, %v2212_v52 }
 0x459   :  { %v2181_v5 = vpop.trf.xlu0 }
 0x45a   :  { %2422 = vst.msk [vmem:[%s4638_s3 + $0x40] sm:$0xff] %vm2413_vm8, %v2181_v5 }
 0x45b   :  { %v2213_v50 = vpop.trf.xlu1 }
 0x45c   :  { %2438 = vst.msk [vmem:[%s4638_s3 + $0xc0] sm:$0xff] %vm2413_vm8, %v2213_v50 }
 0x45d   :  { %v2182_v41 = vpop.trf.xlu0 }
 0x45e   :  { %2423 = vst.msk [vmem:[%s4638_s3 + $0x48] sm:$0xff] %vm2413_vm8, %v2182_v41 }
 0x45f   :  { %v2214_v26 = vpop.trf.xlu1 }
 0x460   :  { %2439 = vst.msk [vmem:[%s4638_s3 + $0xc8] sm:$0xff] %vm2413_vm8, %v2214_v26 }
 0x461   :  { %v2183_v9 = vpop.trf.xlu0 }
 0x462   :  { %2424 = vst.msk [vmem:[%s4638_s3 + $0x50] sm:$0xff] %vm2413_vm8, %v2183_v9 }
 0x463   :  { %v2215_v43 = vpop.trf.xlu1 }
 0x464   :  { %2440 = vst.msk [vmem:[%s4638_s3 + $0xd0] sm:$0xff] %vm2413_vm8, %v2215_v43 }
 0x465   :  { %v2184_v11 = vpop.trf.xlu0 }
 0x466   :  { %2425 = vst.msk [vmem:[%s4638_s3 + $0x58] sm:$0xff] %vm2413_vm8, %v2184_v11 }
 0x467   :  { %v2216_v18 = vpop.trf.xlu1 }
 0x468   :  { %2441 = vst.msk [vmem:[%s4638_s3 + $0xd8] sm:$0xff] %vm2413_vm8, %v2216_v18 }
 0x469   :  { %v2185_v54 = vpop.trf.xlu0 }
 0x46a   :  { %2426 = vst.msk [vmem:[%s4638_s3 + $0x60] sm:$0xff] %vm2413_vm8, %v2185_v54 }
 0x46b   :  { %v2217_v0 = vpop.trf.xlu1 }
 0x46c   :  { %2442 = vst.msk [vmem:[%s4638_s3 + $0xe0] sm:$0xff] %vm2413_vm8, %v2217_v0 }
 0x46d   :  { %v2186_v23 = vpop.trf.xlu0 }
 0x46e   :  { %2427 = vst.msk [vmem:[%s4638_s3 + $0x68] sm:$0xff] %vm2413_vm8, %v2186_v23 }
 0x46f   :  { %v2218_v8 = vpop.trf.xlu1 }
 0x470   :  { %2443 = vst.msk [vmem:[%s4638_s3 + $0xe8] sm:$0xff] %vm2413_vm8, %v2218_v8 }
 0x471   :  { %v2187_v2 = vpop.trf.xlu0 }
 0x472   :  { %2428 = vst.msk [vmem:[%s4638_s3 + $0x70] sm:$0xff] %vm2413_vm8, %v2187_v2 }
 0x473   :  { %v2219_v61 = vpop.trf.xlu1 }
 0x474   :  { %2349 = vxpose.xlu0.b32.start.end [1/1] (short) %v2588_v46, 128  ;;  %2444 = vst.msk [vmem:[%s4638_s3 + $0xf0] sm:$0xff] %vm2413_vm8, %v2219_v61 }
 0x475   :  { %v2188_v49 = vpop.trf.xlu0 }
 0x476   :  { %2381 = vxpose.xlu1.b32.start.end [1/1] (short) %v2589_v21, 128  ;;  %2429 = vst.msk [vmem:[%s4638_s3 + $0x78] sm:$0xff] %vm2413_vm8, %v2188_v49 }
 0x477   :  { %v2220_v4 = vpop.trf.xlu1 }
 0x478   :  { %2445 = vst.msk [vmem:[%s4638_s3 + $0xf8] sm:$0xff] %vm2413_vm8, %v2220_v4 }
 0x479   :  { %v2237_v33 = vpop.trf.xlu0 }
 0x47a   :  { %2446 = vst.msk [vmem:[%s4638_s3 + $0x100] sm:$0xff] %vm2413_vm8, %v2237_v33 }
 0x47b   :  { %v2269_v24 = vpop.trf.xlu1 }
 0x47c   :  { %2462 = vst.msk [vmem:[%s4638_s3 + $0x180] sm:$0xff] %vm2413_vm8, %v2269_v24 }
 0x47d   :  { %v2238_v32 = vpop.trf.xlu0 }
 0x47e   :  { %2447 = vst.msk [vmem:[%s4638_s3 + $0x108] sm:$0xff] %vm2413_vm8, %v2238_v32 }
 0x47f   :  { %v2270_v22 = vpop.trf.xlu1 }
 0x480   :  { %2463 = vst.msk [vmem:[%s4638_s3 + $0x188] sm:$0xff] %vm2413_vm8, %v2270_v22 }
 0x481   :  { %v2239_v60 = vpop.trf.xlu0 }
 0x482   :  { %2448 = vst.msk [vmem:[%s4638_s3 + $0x110] sm:$0xff] %vm2413_vm8, %v2239_v60 }
 0x483   :  { %v2271_v27 = vpop.trf.xlu1 }
 0x484   :  { %2464 = vst.msk [vmem:[%s4638_s3 + $0x190] sm:$0xff] %vm2413_vm8, %v2271_v27 }
 0x485   :  { %v2240_v62 = vpop.trf.xlu0 }
 0x486   :  { %2449 = vst.msk [vmem:[%s4638_s3 + $0x118] sm:$0xff] %vm2413_vm8, %v2240_v62 }
 0x487   :  { %v2272_v13 = vpop.trf.xlu1 }
 0x488   :  { %2465 = vst.msk [vmem:[%s4638_s3 + $0x198] sm:$0xff] %vm2413_vm8, %v2272_v13 }
 0x489   :  { %v2241_v3 = vpop.trf.xlu0 }
 0x48a   :  { %2450 = vst.msk [vmem:[%s4638_s3 + $0x120] sm:$0xff] %vm2413_vm8, %v2241_v3 }
 0x48b   :  { %v2273_v38 = vpop.trf.xlu1 }
 0x48c   :  { %2466 = vst.msk [vmem:[%s4638_s3 + $0x1a0] sm:$0xff] %vm2413_vm8, %v2273_v38 }
 0x48d   :  { %v2242_v36 = vpop.trf.xlu0 }
 0x48e   :  { %2451 = vst.msk [vmem:[%s4638_s3 + $0x128] sm:$0xff] %vm2413_vm8, %v2242_v36 }
 0x48f   :  { %v2274_v56 = vpop.trf.xlu1 }
 0x490   :  { %2467 = vst.msk [vmem:[%s4638_s3 + $0x1a8] sm:$0xff] %vm2413_vm8, %v2274_v56 }
 0x491   :  { %v2243_v63 = vpop.trf.xlu0 }
 0x492   :  { %2452 = vst.msk [vmem:[%s4638_s3 + $0x130] sm:$0xff] %vm2413_vm8, %v2243_v63 }
 0x493   :  { %v2275_v19 = vpop.trf.xlu1 }
 0x494   :  { %2468 = vst.msk [vmem:[%s4638_s3 + $0x1b0] sm:$0xff] %vm2413_vm8, %v2275_v19 }
 0x495   :  { %v2244_v6 = vpop.trf.xlu0 }
 0x496   :  { %2453 = vst.msk [vmem:[%s4638_s3 + $0x138] sm:$0xff] %vm2413_vm8, %v2244_v6 }
 0x497   :  { %v2276_v31 = vpop.trf.xlu1 }
 0x498   :  { %2469 = vst.msk [vmem:[%s4638_s3 + $0x1b8] sm:$0xff] %vm2413_vm8, %v2276_v31 }
 0x499   :  { %v2245_v16 = vpop.trf.xlu0 }
 0x49a   :  { %2454 = vst.msk [vmem:[%s4638_s3 + $0x140] sm:$0xff] %vm2413_vm8, %v2245_v16 }
 0x49b   :  { %v2277_v37 = vpop.trf.xlu1 }
 0x49c   :  { %2470 = vst.msk [vmem:[%s4638_s3 + $0x1c0] sm:$0xff] %vm2413_vm8, %v2277_v37 }
 0x49d   :  { %v2246_v28 = vpop.trf.xlu0 }
 0x49e   :  { %2455 = vst.msk [vmem:[%s4638_s3 + $0x148] sm:$0xff] %vm2413_vm8, %v2246_v28 }
 0x49f   :  { %v2278_v47 = vpop.trf.xlu1 }
 0x4a0   :  { %2471 = vst.msk [vmem:[%s4638_s3 + $0x1c8] sm:$0xff] %vm2413_vm8, %v2278_v47 }
 0x4a1   :  { %v2247_v25 = vpop.trf.xlu0 }
 0x4a2   :  { %2456 = vst.msk [vmem:[%s4638_s3 + $0x150] sm:$0xff] %vm2413_vm8, %v2247_v25 }
 0x4a3   :  { %v2279_v35 = vpop.trf.xlu1 }
 0x4a4   :  { %2472 = vst.msk [vmem:[%s4638_s3 + $0x1d0] sm:$0xff] %vm2413_vm8, %v2279_v35 }
 0x4a5   :  { %v2248_v58 = vpop.trf.xlu0 }
 0x4a6   :  { %2457 = vst.msk [vmem:[%s4638_s3 + $0x158] sm:$0xff] %vm2413_vm8, %v2248_v58 }
 0x4a7   :  { %v2280_v1 = vpop.trf.xlu1 }
 0x4a8   :  { %2473 = vst.msk [vmem:[%s4638_s3 + $0x1d8] sm:$0xff] %vm2413_vm8, %v2280_v1 }
 0x4a9   :  { %v2249_v7 = vpop.trf.xlu0 }
 0x4aa   :  { %2458 = vst.msk [vmem:[%s4638_s3 + $0x160] sm:$0xff] %vm2413_vm8, %v2249_v7 }
 0x4ab   :  { %v2281_v10 = vpop.trf.xlu1 }
 0x4ac   :  { %2474 = vst.msk [vmem:[%s4638_s3 + $0x1e0] sm:$0xff] %vm2413_vm8, %v2281_v10 }
 0x4ad   :  { %v2250_v48 = vpop.trf.xlu0 }
 0x4ae   :  { %2459 = vst.msk [vmem:[%s4638_s3 + $0x168] sm:$0xff] %vm2413_vm8, %v2250_v48 }
 0x4af   :  { %v2282_v52 = vpop.trf.xlu1 }
 0x4b0   :  { %2475 = vst.msk [vmem:[%s4638_s3 + $0x1e8] sm:$0xff] %vm2413_vm8, %v2282_v52 }
 0x4b1   :  { %v2251_v5 = vpop.trf.xlu0 }
 0x4b2   :  { %2460 = vst.msk [vmem:[%s4638_s3 + $0x170] sm:$0xff] %vm2413_vm8, %v2251_v5 }
 0x4b3   :  { %v2283_v50 = vpop.trf.xlu1 }
 0x4b4   :  { %2476 = vst.msk [vmem:[%s4638_s3 + $0x1f0] sm:$0xff] %vm2413_vm8, %v2283_v50 }
 0x4b5   :  { %v2252_v41 = vpop.trf.xlu0 }
 0x4b6   :  { %2461 = vst.msk [vmem:[%s4638_s3 + $0x178] sm:$0xff] %vm2413_vm8, %v2252_v41 }
 0x4b7   :  { %v2284_v26 = vpop.trf.xlu1 }
 0x4b8   :  { %2477 = vst.msk [vmem:[%s4638_s3 + $0x1f8] sm:$0xff] %vm2413_vm8, %v2284_v26 }
 0x4b9   :  { %v2301_v20 = vpop.trf.xlu0 }
 0x4ba   :  { %2478 = vst.msk [vmem:[%s4638_s3 + $0x200] sm:$0xff] %vm2413_vm8, %v2301_v20 }
 0x4bb   :  { %v2333_v9 = vpop.trf.xlu1 }
 0x4bc   :  { %2494 = vst.msk [vmem:[%s4638_s3 + $0x280] sm:$0xff] %vm2413_vm8, %v2333_v9 }
 0x4bd   :  { %v2302_v17 = vpop.trf.xlu0 }
 0x4be   :  { %2479 = vst.msk [vmem:[%s4638_s3 + $0x208] sm:$0xff] %vm2413_vm8, %v2302_v17 }
 0x4bf   :  { %v2334_v43 = vpop.trf.xlu1 }
 0x4c0   :  { %2495 = vst.msk [vmem:[%s4638_s3 + $0x288] sm:$0xff] %vm2413_vm8, %v2334_v43 }
 0x4c1   :  { %v2303_v15 = vpop.trf.xlu0 }
 0x4c2   :  { %2480 = vst.msk [vmem:[%s4638_s3 + $0x210] sm:$0xff] %vm2413_vm8, %v2303_v15 }
 0x4c3   :  { %v2335_v59 = vpop.trf.xlu1 }
 0x4c4   :  { %2496 = vst.msk [vmem:[%s4638_s3 + $0x290] sm:$0xff] %vm2413_vm8, %v2335_v59 }
 0x4c5   :  { %v2304_v11 = vpop.trf.xlu0 }
 0x4c6   :  { %2481 = vst.msk [vmem:[%s4638_s3 + $0x218] sm:$0xff] %vm2413_vm8, %v2304_v11 }
 0x4c7   :  { %v2336_v55 = vpop.trf.xlu1 }
 0x4c8   :  { %2497 = vst.msk [vmem:[%s4638_s3 + $0x298] sm:$0xff] %vm2413_vm8, %v2336_v55 }
 0x4c9   :  { %v2305_v12 = vpop.trf.xlu0 }
 0x4ca   :  { %2482 = vst.msk [vmem:[%s4638_s3 + $0x220] sm:$0xff] %vm2413_vm8, %v2305_v12 }
 0x4cb   :  { %v2337_v34 = vpop.trf.xlu1 }
 0x4cc   :  { %2498 = vst.msk [vmem:[%s4638_s3 + $0x2a0] sm:$0xff] %vm2413_vm8, %v2337_v34 }
 0x4cd   :  { %v2306_v53 = vpop.trf.xlu0 }
 0x4ce   :  { %2483 = vst.msk [vmem:[%s4638_s3 + $0x228] sm:$0xff] %vm2413_vm8, %v2306_v53 }
 0x4cf   :  { %v2338_v18 = vpop.trf.xlu1 }
 0x4d0   :  { %2499 = vst.msk [vmem:[%s4638_s3 + $0x2a8] sm:$0xff] %vm2413_vm8, %v2338_v18 }
 0x4d1   :  { %v2307_v45 = vpop.trf.xlu0 }
 0x4d2   :  { %2484 = vst.msk [vmem:[%s4638_s3 + $0x230] sm:$0xff] %vm2413_vm8, %v2307_v45 }
 0x4d3   :  { %v2339_v42 = vpop.trf.xlu1 }
 0x4d4   :  { %2500 = vst.msk [vmem:[%s4638_s3 + $0x2b0] sm:$0xff] %vm2413_vm8, %v2339_v42 }
 0x4d5   :  { %v2308_v30 = vpop.trf.xlu0 }
 0x4d6   :  { %2485 = vst.msk [vmem:[%s4638_s3 + $0x238] sm:$0xff] %vm2413_vm8, %v2308_v30 }
 0x4d7   :  { %v2340_v54 = vpop.trf.xlu1 }
 0x4d8   :  { %2501 = vst.msk [vmem:[%s4638_s3 + $0x2b8] sm:$0xff] %vm2413_vm8, %v2340_v54 }
 0x4d9   :  { %v2309_v14 = vpop.trf.xlu0 }
 0x4da   :  { %2486 = vst.msk [vmem:[%s4638_s3 + $0x240] sm:$0xff] %vm2413_vm8, %v2309_v14 }
 0x4db   :  { %v2341_v39 = vpop.trf.xlu1 }
 0x4dc   :  { %2502 = vst.msk [vmem:[%s4638_s3 + $0x2c0] sm:$0xff] %vm2413_vm8, %v2341_v39 }
 0x4dd   :  { %v2310_v0 = vpop.trf.xlu0 }
 0x4de   :  { %2487 = vst.msk [vmem:[%s4638_s3 + $0x248] sm:$0xff] %vm2413_vm8, %v2310_v0 }
 0x4df   :  { %v2342_v57 = vpop.trf.xlu1 }
 0x4e0   :  { %2503 = vst.msk [vmem:[%s4638_s3 + $0x2c8] sm:$0xff] %vm2413_vm8, %v2342_v57 }
 0x4e1   :  { %v2311_v44 = vpop.trf.xlu0 }
 0x4e2   :  { %2488 = vst.msk [vmem:[%s4638_s3 + $0x250] sm:$0xff] %vm2413_vm8, %v2311_v44 }
 0x4e3   :  { %v2343_v23 = vpop.trf.xlu1 }
 0x4e4   :  { %2504 = vst.msk [vmem:[%s4638_s3 + $0x2d0] sm:$0xff] %vm2413_vm8, %v2343_v23 }
 0x4e5   :  { %v2312_v51 = vpop.trf.xlu0 }
 0x4e6   :  { %2489 = vst.msk [vmem:[%s4638_s3 + $0x258] sm:$0xff] %vm2413_vm8, %v2312_v51 }
 0x4e7   :  { %v2344_v40 = vpop.trf.xlu1 }
 0x4e8   :  { %2505 = vst.msk [vmem:[%s4638_s3 + $0x2d8] sm:$0xff] %vm2413_vm8, %v2344_v40 }
 0x4e9   :  { %v2313_v8 = vpop.trf.xlu0 }
 0x4ea   :  { %2490 = vst.msk [vmem:[%s4638_s3 + $0x260] sm:$0xff] %vm2413_vm8, %v2313_v8 }
 0x4eb   :  { %v2345_v29 = vpop.trf.xlu1 }
 0x4ec   :  { %2506 = vst.msk [vmem:[%s4638_s3 + $0x2e0] sm:$0xff] %vm2413_vm8, %v2345_v29 }
 0x4ed   :  { %v2314_v2 = vpop.trf.xlu0 }
 0x4ee   :  { %2491 = vst.msk [vmem:[%s4638_s3 + $0x268] sm:$0xff] %vm2413_vm8, %v2314_v2 }
 0x4ef   :  { %v2346_v46 = vpop.trf.xlu1 }
 0x4f0   :  { %2507 = vst.msk [vmem:[%s4638_s3 + $0x2e8] sm:$0xff] %vm2413_vm8, %v2346_v46 }
 0x4f1   :  { %v2315_v61 = vpop.trf.xlu0 }
 0x4f2   :  { %2492 = vst.msk [vmem:[%s4638_s3 + $0x270] sm:$0xff] %vm2413_vm8, %v2315_v61 }
 0x4f3   :  { %v2347_v21 = vpop.trf.xlu1 }
 0x4f4   :  { %2508 = vst.msk [vmem:[%s4638_s3 + $0x2f0] sm:$0xff] %vm2413_vm8, %v2347_v21 }
 0x4f5   :  { %v2316_v49 = vpop.trf.xlu0 }
 0x4f6   :  { %2493 = vst.msk [vmem:[%s4638_s3 + $0x278] sm:$0xff] %vm2413_vm8, %v2316_v49 }
 0x4f7   :  { %v2348_v4 = vpop.trf.xlu1 }
 0x4f8   :  { %2509 = vst.msk [vmem:[%s4638_s3 + $0x2f8] sm:$0xff] %vm2413_vm8, %v2348_v4 }
 0x4f9   :  { %v2365_v33 = vpop.trf.xlu0 }
 0x4fa   :  { %2510 = vst.msk [vmem:[%s4638_s3 + $0x300] sm:$0xff] %vm2413_vm8, %v2365_v33 }
 0x4fb   :  { %v2397_v24 = vpop.trf.xlu1 }
 0x4fc   :  { %2526 = vst.msk [vmem:[%s4638_s3 + $0x380] sm:$0xff] %vm2413_vm8, %v2397_v24 }
 0x4fd   :  { %v2366_v32 = vpop.trf.xlu0 }
 0x4fe   :  { %2511 = vst.msk [vmem:[%s4638_s3 + $0x308] sm:$0xff] %vm2413_vm8, %v2366_v32 }
 0x4ff   :  { %v2398_v22 = vpop.trf.xlu1 }
 0x500   :  { %2527 = vst.msk [vmem:[%s4638_s3 + $0x388] sm:$0xff] %vm2413_vm8, %v2398_v22 }
 0x501   :  { %v2367_v60 = vpop.trf.xlu0 }
 0x502   :  { %2512 = vst.msk [vmem:[%s4638_s3 + $0x310] sm:$0xff] %vm2413_vm8, %v2367_v60 }
 0x503   :  { %v2399_v27 = vpop.trf.xlu1 }
 0x504   :  { %2528 = vst.msk [vmem:[%s4638_s3 + $0x390] sm:$0xff] %vm2413_vm8, %v2399_v27 }
 0x505   :  { %v2368_v62 = vpop.trf.xlu0 }
 0x506   :  { %2513 = vst.msk [vmem:[%s4638_s3 + $0x318] sm:$0xff] %vm2413_vm8, %v2368_v62 }
 0x507   :  { %v2400_v13 = vpop.trf.xlu1 }
 0x508   :  { %2529 = vst.msk [vmem:[%s4638_s3 + $0x398] sm:$0xff] %vm2413_vm8, %v2400_v13 }
 0x509   :  { %v2369_v3 = vpop.trf.xlu0 }
 0x50a   :  { %2514 = vst.msk [vmem:[%s4638_s3 + $0x320] sm:$0xff] %vm2413_vm8, %v2369_v3 }
 0x50b   :  { %v2401_v38 = vpop.trf.xlu1 }
 0x50c   :  { %2530 = vst.msk [vmem:[%s4638_s3 + $0x3a0] sm:$0xff] %vm2413_vm8, %v2401_v38 }
 0x50d   :  { %v2370_v36 = vpop.trf.xlu0 }
 0x50e   :  { %2515 = vst.msk [vmem:[%s4638_s3 + $0x328] sm:$0xff] %vm2413_vm8, %v2370_v36 }
 0x50f   :  { %v2402_v56 = vpop.trf.xlu1 }
 0x510   :  { %2531 = vst.msk [vmem:[%s4638_s3 + $0x3a8] sm:$0xff] %vm2413_vm8, %v2402_v56 }
 0x511   :  { %v2371_v63 = vpop.trf.xlu0 }
 0x512   :  { %2516 = vst.msk [vmem:[%s4638_s3 + $0x330] sm:$0xff] %vm2413_vm8, %v2371_v63 }
 0x513   :  { %v2403_v19 = vpop.trf.xlu1 }
 0x514   :  { %2532 = vst.msk [vmem:[%s4638_s3 + $0x3b0] sm:$0xff] %vm2413_vm8, %v2403_v19 }
 0x515   :  { %v2372_v6 = vpop.trf.xlu0 }
 0x516   :  { %2517 = vst.msk [vmem:[%s4638_s3 + $0x338] sm:$0xff] %vm2413_vm8, %v2372_v6 }
 0x517   :  { %v2404_v31 = vpop.trf.xlu1 }
 0x518   :  { %2533 = vst.msk [vmem:[%s4638_s3 + $0x3b8] sm:$0xff] %vm2413_vm8, %v2404_v31 }
 0x519   :  { %v2373_v16 = vpop.trf.xlu0 }
 0x51a   :  { %2518 = vst.msk [vmem:[%s4638_s3 + $0x340] sm:$0xff] %vm2413_vm8, %v2373_v16 }
 0x51b   :  { %v2405_v37 = vpop.trf.xlu1 }
 0x51c   :  { %2534 = vst.msk [vmem:[%s4638_s3 + $0x3c0] sm:$0xff] %vm2413_vm8, %v2405_v37 }
 0x51d   :  { %v2374_v28 = vpop.trf.xlu0 }
 0x51e   :  { %2519 = vst.msk [vmem:[%s4638_s3 + $0x348] sm:$0xff] %vm2413_vm8, %v2374_v28 }
 0x51f   :  { %v2406_v47 = vpop.trf.xlu1 }
 0x520   :  { %2535 = vst.msk [vmem:[%s4638_s3 + $0x3c8] sm:$0xff] %vm2413_vm8, %v2406_v47 }
 0x521   :  { %v2375_v25 = vpop.trf.xlu0 }
 0x522   :  { %2520 = vst.msk [vmem:[%s4638_s3 + $0x350] sm:$0xff] %vm2413_vm8, %v2375_v25 }
 0x523   :  { %v2407_v35 = vpop.trf.xlu1 }
 0x524   :  { %2536 = vst.msk [vmem:[%s4638_s3 + $0x3d0] sm:$0xff] %vm2413_vm8, %v2407_v35 }
 0x525   :  { %v2376_v58 = vpop.trf.xlu0 }
 0x526   :  { %2521 = vst.msk [vmem:[%s4638_s3 + $0x358] sm:$0xff] %vm2413_vm8, %v2376_v58 }
 0x527   :  { %v2408_v1 = vpop.trf.xlu1 }
 0x528   :  { %2537 = vst.msk [vmem:[%s4638_s3 + $0x3d8] sm:$0xff] %vm2413_vm8, %v2408_v1 }
 0x529   :  { %v2377_v7 = vpop.trf.xlu0 }
 0x52a   :  { %2522 = vst.msk [vmem:[%s4638_s3 + $0x360] sm:$0xff] %vm2413_vm8, %v2377_v7 }
 0x52b   :  { %v2409_v10 = vpop.trf.xlu1 }
 0x52c   :  { %2538 = vst.msk [vmem:[%s4638_s3 + $0x3e0] sm:$0xff] %vm2413_vm8, %v2409_v10 }
 0x52d   :  { %v2378_v48 = vpop.trf.xlu0 }
 0x52e   :  { %2523 = vst.msk [vmem:[%s4638_s3 + $0x368] sm:$0xff] %vm2413_vm8, %v2378_v48 }
 0x52f   :  { %v2410_v52 = vpop.trf.xlu1 }
 0x530   :  { %2539 = vst.msk [vmem:[%s4638_s3 + $0x3e8] sm:$0xff] %vm2413_vm8, %v2410_v52 }
 0x531   :  { %v2379_v5 = vpop.trf.xlu0 }
 0x532   :  { %2524 = vst.msk [vmem:[%s4638_s3 + $0x370] sm:$0xff] %vm2413_vm8, %v2379_v5 }
 0x533   :  { %v2411_v50 = vpop.trf.xlu1 }
 0x534   :  { %2540 = vst.msk [vmem:[%s4638_s3 + $0x3f0] sm:$0xff] %vm2413_vm8, %v2411_v50 }
 0x535   :  { %v2380_v41 = vpop.trf.xlu0 }
 0x536   :  { %2525 = vst.msk [vmem:[%s4638_s3 + $0x378] sm:$0xff] %vm2413_vm8, %v2380_v41 }
 0x537   :  { %v2412_v26 = vpop.trf.xlu1 }
 0x538   :  { %2541 = vst.msk [vmem:[%s4638_s3 + $0x3f8] sm:$0xff] %vm2413_vm8, %v2412_v26 }

</bundles_post_ra>
